<compile_context>
chip_gen: v5e
topology: v5e:2x2
jax: 0.10.0
libtpu: 0.0.40
codegen_flags: <defaults>
</compile_context>

<pallas_src>
import jax
import jax.numpy as jnp
from jax import lax
from jax.experimental import pallas as pl
from jax.experimental.pallas import tpu as pltpu


# ----------------------------------------------------------------------------
# In-kernel helper
# ----------------------------------------------------------------------------
def _ln(x, gamma, beta, eps=1e-5):
    """LayerNorm over the last dim (biased variance), matching nn.LayerNorm."""
    mu = jnp.mean(x, axis=-1, keepdims=True)
    var = jnp.mean((x - mu) ** 2, axis=-1, keepdims=True)
    return (x - mu) * lax.rsqrt(var + eps) * gamma + beta


# ----------------------------------------------------------------------------
# Fused kernel: feature extractor -> LSTM -> head, everything resident in VMEM.
#
# x_ref is the time-major flattened input, shape (T*B, D) with row = t*B + b.
# Outputs: lstm_o_ref (T, B, H) time-major hidden states, rew_ref (T*B, 1).
# ----------------------------------------------------------------------------
def _csc_fused_kernel(
    x_ref,
    # feature extractor
    fw1_ref, fb1_ref, fg1_ref, fbe1_ref,
    fw2_ref, fb2_ref, fg2_ref, fbe2_ref,
    # LSTM
    wih_ref, whh_ref, bl_ref,
    # head
    w1a_ref, w1b_ref, hb1_ref, hg1_ref, hbe1_ref,
    w2_ref, hb2_ref, hg2_ref, hbe2_ref,
    w3_ref, hb3_ref,
    # outputs
    lstm_o_ref, rew_ref,
    # scratch
    lstm_sc,
):
    T, B, H = lstm_o_ref.shape

    # ---- Feature extractor: Linear -> LN -> ReLU -> Linear -> LN -> ReLU ----
    x = x_ref[...]                                                   # (N, D)
    h = jnp.dot(x, fw1_ref[...], preferred_element_type=jnp.float32) + fb1_ref[...]
    h = jnp.maximum(_ln(h, fg1_ref[...], fbe1_ref[...]), 0.0)
    # Dropout(0.3) is identity at inference.
    h = jnp.dot(h, fw2_ref[...], preferred_element_type=jnp.float32) + fb2_ref[...]
    feats = jnp.maximum(_ln(h, fg2_ref[...], fbe2_ref[...]), 0.0)    # (N, F)

    # ---- LSTM: hoist the input projection out of the recurrence ------------
    # One big (N, F) x (F, 4H) matmul for all timesteps; combined b_ih + b_hh.
    xproj = jnp.dot(feats, wih_ref[...], preferred_element_type=jnp.float32) + bl_ref[...]

    whh = whh_ref[...]                                               # (H, 4H)
    h_t = jnp.zeros((B, H), jnp.float32)
    c_t = jnp.zeros((B, H), jnp.float32)

    # Static unroll of the short, fixed-length time loop.
    # TODO(synk): for long sequences switch to lax.fori_loop(..., unroll=k) and
    # block the lstm_out writeback over T to bound VMEM on v7x.
    for t in range(T):
        gates = xproj[t * B:(t + 1) * B, :] + jnp.dot(
            h_t, whh, preferred_element_type=jnp.float32)            # (B, 4H)
        sig = jax.nn.sigmoid(gates)
        th = jnp.tanh(gates)
        i_g = sig[:, 0 * H:1 * H]
        f_g = sig[:, 1 * H:2 * H]
        g_g = th[:, 2 * H:3 * H]
        o_g = sig[:, 3 * H:4 * H]
        c_t = f_g * c_t + i_g * g_g
        h_t = o_g * jnp.tanh(c_t)
        lstm_o_ref[t] = h_t                                          # (B, H)
        lstm_sc[t * B:(t + 1) * B, :] = h_t                          # time-major slab

    # ---- Head on cat([lstm_out, feats], -1), concat avoided by splitting W1 -
    lstm_all = lstm_sc[...]                                          # (N, H)
    h1 = (jnp.dot(lstm_all, w1a_ref[...], preferred_element_type=jnp.float32)
          + jnp.dot(feats, w1b_ref[...], preferred_element_type=jnp.float32)
          + hb1_ref[...])
    h1 = jnp.maximum(_ln(h1, hg1_ref[...], hbe1_ref[...]), 0.0)
    h2 = jnp.dot(h1, w2_ref[...], preferred_element_type=jnp.float32) + hb2_ref[...]
    h2 = jnp.maximum(_ln(h2, hg2_ref[...], hbe2_ref[...]), 0.0)
    # Final 64->1 projection as VPU multiply + lane reduce (no 1-wide MXU matmul).
    rew_ref[...] = jnp.sum(h2 * w3_ref[...], axis=-1, keepdims=True) + hb3_ref[...]


# ----------------------------------------------------------------------------
# One-time parameter preparation (transposes / splits / bias reshapes)
# ----------------------------------------------------------------------------
def prepare_params(p):
    H = p["w_hh"].shape[1]
    r = lambda v: v.reshape(1, -1)
    return {
        "fe_w1": p["fe_w1"].T, "fe_b1": r(p["fe_b1"]),
        "fe_g1": r(p["fe_g1"]), "fe_be1": r(p["fe_be1"]),
        "fe_w2": p["fe_w2"].T, "fe_b2": r(p["fe_b2"]),
        "fe_g2": r(p["fe_g2"]), "fe_be2": r(p["fe_be2"]),
        "w_ih": p["w_ih"].T,                    # (F, 4H)
        "w_hh": p["w_hh"].T,                    # (H, 4H)
        "b_lstm": r(p["b_ih"] + p["b_hh"]),     # (1, 4H)
        "h_w1a": p["h_w1"][:, :H].T,            # (H, 128)
        "h_w1b": p["h_w1"][:, H:].T,            # (F, 128)
        "h_b1": r(p["h_b1"]), "h_g1": r(p["h_g1"]), "h_be1": r(p["h_be1"]),
        "h_w2": p["h_w2"].T,                    # (128, 64)
        "h_b2": r(p["h_b2"]), "h_g2": r(p["h_g2"]), "h_be2": r(p["h_be2"]),
        "h_w3": p["h_w3"],                      # (1, 64) -> used as VPU row
        "h_b3": p["h_b3"].reshape(1, 1),
    }


# ----------------------------------------------------------------------------
# Forward wrapper
# ----------------------------------------------------------------------------
@jax.jit
def csc_forward(prep, state_action_seq):
    """Pallas implementation of CSCInstanceSpaceLSTM.forward (eval mode)."""
    B, T, D = state_action_seq.shape
    N = B * T
    H = prep["w_hh"].shape[0]

    # Time-major flat layout: row = t*B + b.
    x_tm = jnp.transpose(state_action_seq, (1, 0, 2)).reshape(N, D)

    lstm_tm, r = pl.pallas_call(
        _csc_fused_kernel,
        out_shape=(
            jax.ShapeDtypeStruct((T, B, H), jnp.float32),   # LSTM hidden states
            jax.ShapeDtypeStruct((N, 1), jnp.float32),      # per-token rewards
        ),
        scratch_shapes=[pltpu.VMEM((N, H), jnp.float32)],   # time-major lstm_out slab
    )(
        x_tm,
        prep["fe_w1"], prep["fe_b1"], prep["fe_g1"], prep["fe_be1"],
        prep["fe_w2"], prep["fe_b2"], prep["fe_g2"], prep["fe_be2"],
        prep["w_ih"], prep["w_hh"], prep["b_lstm"],
        prep["h_w1a"], prep["h_w1b"], prep["h_b1"], prep["h_g1"], prep["h_be1"],
        prep["h_w2"], prep["h_b2"], prep["h_g2"], prep["h_be2"],
        prep["h_w3"], prep["h_b3"],
    )

    lstm_out = jnp.transpose(lstm_tm, (1, 0, 2))            # (B, T, H) batch-first
    rewards = r.reshape(T, B).T                             # (B, T)
    return rewards, jnp.sum(rewards, axis=1), lstm_out


# ----------------------------------------------------------------------------
# Deterministic parameter init (shapes match the PyTorch module)
# ----------------------------------------------------------------------------
def init_params(key, state_dim, action_dim, feature_dim=64, lstm_hidden_dim=32):
    D = state_dim + action_dim
    ks = jax.random.split(key, 10)

    def lin(k, out_d, in_d):
        kw, kb = jax.random.split(k)
        bound = 1.0 / (in_d ** 0.5)
        w = jax.random.uniform(kw, (out_d, in_d), jnp.float32, -bound, bound)
        b = jax.random.uniform(kb, (out_d,), jnp.float32, -bound, bound)
        return w, b

    p = {}
    # feature extractor
    p["fe_w1"], p["fe_b1"] = lin(ks[0], feature_dim, D)
    p["fe_g1"], p["fe_be1"] = jnp.ones((feature_dim,), jnp.float32), jnp.zeros((feature_dim,), jnp.float32)
    p["fe_w2"], p["fe_b2"] = lin(ks[1], feature_dim, feature_dim)
    p["fe_g2"], p["fe_be2"] = jnp.ones((feature_dim,), jnp.float32), jnp.zeros((feature_dim,), jnp.float32)
    # LSTM (PyTorch layout: (4H, in), gate order i,f,g,o)
    bnd = 1.0 / (lstm_hidden_dim ** 0.5)
    p["w_ih"] = jax.random.uniform(ks[2], (4 * lstm_hidden_dim, feature_dim), jnp.float32, -bnd, bnd)
    p["w_hh"] = jax.random.uniform(ks[3], (4 * lstm_hidden_dim, lstm_hidden_dim), jnp.float32, -bnd, bnd)
    p["b_ih"] = jax.random.uniform(ks[4], (4 * lstm_hidden_dim,), jnp.float32, -bnd, bnd)
    p["b_hh"] = jax.random.uniform(ks[5], (4 * lstm_hidden_dim,), jnp.float32, -bnd, bnd)
    # head
    p["h_w1"], p["h_b1"] = lin(ks[6], 128, lstm_hidden_dim + feature_dim)
    p["h_g1"], p["h_be1"] = jnp.ones((128,), jnp.float32), jnp.zeros((128,), jnp.float32)
    p["h_w2"], p["h_b2"] = lin(ks[7], 64, 128)
    p["h_g2"], p["h_be2"] = jnp.ones((64,), jnp.float32), jnp.zeros((64,), jnp.float32)
    p["h_w3"], p["h_b3"] = lin(ks[8], 1, 64)
    return p


# ----------------------------------------------------------------------------
# Pure-JAX reference (mirrors the PyTorch forward) for a numerical sanity check
# ----------------------------------------------------------------------------
def _ref_forward(p, x):
    B, T, D = x.shape
    F = p["fe_w1"].shape[0]
    H = p["w_hh"].shape[1]

    def ln(v, g, b):
        mu = jnp.mean(v, -1, keepdims=True)
        var = jnp.mean((v - mu) ** 2, -1, keepdims=True)
        return (v - mu) / jnp.sqrt(var + 1e-5) * g + b

    h = x.reshape(B * T, D) @ p["fe_w1"].T + p["fe_b1"]
    h = jnp.maximum(ln(h, p["fe_g1"], p["fe_be1"]), 0.0)
    h = h @ p["fe_w2"].T + p["fe_b2"]
    feats = jnp.maximum(ln(h, p["fe_g2"], p["fe_be2"]), 0.0).reshape(B, T, F)

    def step(carry, x_t):
        hh, cc = carry
        gates = x_t @ p["w_ih"].T + hh @ p["w_hh"].T + p["b_ih"] + p["b_hh"]
        i, f, g, o = jnp.split(gates, 4, axis=-1)
        cc = jax.nn.sigmoid(f) * cc + jax.nn.sigmoid(i) * jnp.tanh(g)
        hh = jax.nn.sigmoid(o) * jnp.tanh(cc)
        return (hh, cc), hh

    init = (jnp.zeros((B, H), jnp.float32), jnp.zeros((B, H), jnp.float32))
    _, lstm_out = lax.scan(step, init, jnp.transpose(feats, (1, 0, 2)))
    lstm_out = jnp.transpose(lstm_out, (1, 0, 2))

    cat = jnp.concatenate([lstm_out, feats], axis=-1).reshape(B * T, H + F)
    h = jnp.maximum(ln(cat @ p["h_w1"].T + p["h_b1"], p["h_g1"], p["h_be1"]), 0.0)
    h = jnp.maximum(ln(h @ p["h_w2"].T + p["h_b2"], p["h_g2"], p["h_be2"]), 0.0)
    rewards = (h @ p["h_w3"].T + p["h_b3"]).reshape(B, T)
    return rewards, rewards.sum(axis=1), lstm_out


# ----------------------------------------------------------------------------
if __name__ == "__main__":
    state_dim, action_dim = 12, 4          # D = 16
    feature_dim, lstm_hidden_dim = 64, 32
    B, T = 2, 8

    key = jax.random.PRNGKey(0)
    kp, kx = jax.random.split(key)
    params = init_params(kp, state_dim, action_dim, feature_dim, lstm_hidden_dim)
    x = jax.random.normal(kx, (B, T, state_dim + action_dim), jnp.float32)

    prep = prepare_params(params)          # one-time weight prep (transposes/splits)

    rewards, rewards_sum, lstm_out = jax.block_until_ready(csc_forward(prep, x))
    r_ref, rs_ref, lo_ref = jax.block_until_ready(_ref_forward(params, x))

    assert rewards.shape == (B, T) and rewards_sum.shape == (B,) and lstm_out.shape == (B, T, lstm_hidden_dim)
    assert jnp.allclose(rewards, r_ref, rtol=5e-3, atol=5e-3)
    assert jnp.allclose(rewards_sum, rs_ref, rtol=5e-3, atol=5e-3)
    assert jnp.allclose(lstm_out, lo_ref, rtol=5e-3, atol=5e-3)

    print("KERNEL_OK")
</pallas_src>

<mosaic_0001>
module attributes {stable_mosaic.version = 11 : i64} {
  func.func @_csc_fused_kernel(%arg0: memref<16x16xf32, #tpu.memory_space<vmem>>, %arg1: memref<16x64xf32, #tpu.memory_space<vmem>>, %arg2: memref<1x64xf32, #tpu.memory_space<vmem>>, %arg3: memref<1x64xf32, #tpu.memory_space<vmem>>, %arg4: memref<1x64xf32, #tpu.memory_space<vmem>>, %arg5: memref<64x64xf32, #tpu.memory_space<vmem>>, %arg6: memref<1x64xf32, #tpu.memory_space<vmem>>, %arg7: memref<1x64xf32, #tpu.memory_space<vmem>>, %arg8: memref<1x64xf32, #tpu.memory_space<vmem>>, %arg9: memref<64x128xf32, #tpu.memory_space<vmem>>, %arg10: memref<32x128xf32, #tpu.memory_space<vmem>>, %arg11: memref<1x128xf32, #tpu.memory_space<vmem>>, %arg12: memref<32x128xf32, #tpu.memory_space<vmem>>, %arg13: memref<64x128xf32, #tpu.memory_space<vmem>>, %arg14: memref<1x128xf32, #tpu.memory_space<vmem>>, %arg15: memref<1x128xf32, #tpu.memory_space<vmem>>, %arg16: memref<1x128xf32, #tpu.memory_space<vmem>>, %arg17: memref<128x64xf32, #tpu.memory_space<vmem>>, %arg18: memref<1x64xf32, #tpu.memory_space<vmem>>, %arg19: memref<1x64xf32, #tpu.memory_space<vmem>>, %arg20: memref<1x64xf32, #tpu.memory_space<vmem>>, %arg21: memref<1x64xf32, #tpu.memory_space<vmem>>, %arg22: memref<1x1xf32, #tpu.memory_space<vmem>>, %arg23: memref<8x2x32xf32, #tpu.memory_space<vmem>>, %arg24: memref<16x1xf32, #tpu.memory_space<vmem>>, %arg25: memref<16x32xf32, #tpu.memory_space<vmem>>) attributes {dimension_semantics = [], scalar_prefetch = 0 : i64, scratch_operands = 1 : i64, tpu.core_type = #tpu.core_type<tc>} {
    %c0 = arith.constant 0 : index
    %c0_0 = arith.constant 0 : index
    %0 = vector.load %arg0[%c0, %c0_0] : memref<16x16xf32, #tpu.memory_space<vmem>>, vector<16x16xf32>
    %c0_1 = arith.constant 0 : index
    %c0_2 = arith.constant 0 : index
    %1 = vector.load %arg1[%c0_1, %c0_2] : memref<16x64xf32, #tpu.memory_space<vmem>>, vector<16x64xf32>
    %cst = arith.constant dense<0.000000e+00> : vector<16x64xf32>
    %2 = tpu.matmul %0, %1, %cst {dimension_numbers = #tpu.dot_dimension_numbers<[1], [0], [0], [1], [0, 0, 1, 1], [], []>} : vector<16x16xf32>, vector<16x64xf32>, vector<16x64xf32> -> vector<16x64xf32>
    %c0_3 = arith.constant 0 : index
    %c0_4 = arith.constant 0 : index
    %3 = vector.load %arg2[%c0_3, %c0_4] : memref<1x64xf32, #tpu.memory_space<vmem>>, vector<1x64xf32>
    %4 = vector.broadcast %3 : vector<1x64xf32> to vector<16x64xf32>
    %5 = arith.addf %2, %4 : vector<16x64xf32>
    %c0_5 = arith.constant 0 : index
    %c0_6 = arith.constant 0 : index
    %6 = vector.load %arg3[%c0_5, %c0_6] : memref<1x64xf32, #tpu.memory_space<vmem>>, vector<1x64xf32>
    %c0_7 = arith.constant 0 : index
    %c0_8 = arith.constant 0 : index
    %7 = vector.load %arg4[%c0_7, %c0_8] : memref<1x64xf32, #tpu.memory_space<vmem>>, vector<1x64xf32>
    %cst_9 = arith.constant dense<0.000000e+00> : vector<16xf32>
    %8 = vector.multi_reduction <add>, %5, %cst_9 [1] : vector<16x64xf32> to vector<16xf32>
    %9 = vector.shape_cast %8 : vector<16xf32> to vector<16x1xf32>
    %cst_10 = arith.constant 6.400000e+01 : f32
    %10 = vector.broadcast %cst_10 : f32 to vector<16x1xf32>
    %11 = arith.divf %9, %10 : vector<16x1xf32>
    %12 = vector.broadcast %11 : vector<16x1xf32> to vector<16x64xf32>
    %13 = arith.subf %5, %12 : vector<16x64xf32>
    %14 = arith.mulf %13, %13 : vector<16x64xf32>
    %cst_11 = arith.constant dense<0.000000e+00> : vector<16xf32>
    %15 = vector.multi_reduction <add>, %14, %cst_11 [1] : vector<16x64xf32> to vector<16xf32>
    %16 = vector.shape_cast %15 : vector<16xf32> to vector<16x1xf32>
    %cst_12 = arith.constant 6.400000e+01 : f32
    %17 = vector.broadcast %cst_12 : f32 to vector<16x1xf32>
    %18 = arith.divf %16, %17 : vector<16x1xf32>
    %19 = vector.broadcast %11 : vector<16x1xf32> to vector<16x64xf32>
    %20 = arith.subf %5, %19 : vector<16x64xf32>
    %cst_13 = arith.constant 9.99999974E-6 : f32
    %21 = vector.broadcast %cst_13 : f32 to vector<16x1xf32>
    %22 = arith.addf %18, %21 : vector<16x1xf32>
    %23 = math.rsqrt %22 : vector<16x1xf32>
    %24 = vector.broadcast %23 : vector<16x1xf32> to vector<16x64xf32>
    %25 = arith.mulf %20, %24 : vector<16x64xf32>
    %26 = vector.broadcast %6 : vector<1x64xf32> to vector<16x64xf32>
    %27 = arith.mulf %25, %26 : vector<16x64xf32>
    %28 = vector.broadcast %7 : vector<1x64xf32> to vector<16x64xf32>
    %29 = arith.addf %27, %28 : vector<16x64xf32>
    %cst_14 = arith.constant 0.000000e+00 : f32
    %30 = vector.broadcast %cst_14 : f32 to vector<16x64xf32>
    %31 = arith.maximumf %29, %30 : vector<16x64xf32>
    %c0_15 = arith.constant 0 : index
    %c0_16 = arith.constant 0 : index
    %32 = vector.load %arg5[%c0_15, %c0_16] : memref<64x64xf32, #tpu.memory_space<vmem>>, vector<64x64xf32>
    %cst_17 = arith.constant dense<0.000000e+00> : vector<16x64xf32>
    %33 = tpu.matmul %31, %32, %cst_17 {dimension_numbers = #tpu.dot_dimension_numbers<[1], [0], [0], [1], [0, 0, 1, 1], [], []>} : vector<16x64xf32>, vector<64x64xf32>, vector<16x64xf32> -> vector<16x64xf32>
    %c0_18 = arith.constant 0 : index
    %c0_19 = arith.constant 0 : index
    %34 = vector.load %arg6[%c0_18, %c0_19] : memref<1x64xf32, #tpu.memory_space<vmem>>, vector<1x64xf32>
    %35 = vector.broadcast %34 : vector<1x64xf32> to vector<16x64xf32>
    %36 = arith.addf %33, %35 : vector<16x64xf32>
    %c0_20 = arith.constant 0 : index
    %c0_21 = arith.constant 0 : index
    %37 = vector.load %arg7[%c0_20, %c0_21] : memref<1x64xf32, #tpu.memory_space<vmem>>, vector<1x64xf32>
    %c0_22 = arith.constant 0 : index
    %c0_23 = arith.constant 0 : index
    %38 = vector.load %arg8[%c0_22, %c0_23] : memref<1x64xf32, #tpu.memory_space<vmem>>, vector<1x64xf32>
    %cst_24 = arith.constant dense<0.000000e+00> : vector<16xf32>
    %39 = vector.multi_reduction <add>, %36, %cst_24 [1] : vector<16x64xf32> to vector<16xf32>
    %40 = vector.shape_cast %39 : vector<16xf32> to vector<16x1xf32>
    %cst_25 = arith.constant 6.400000e+01 : f32
    %41 = vector.broadcast %cst_25 : f32 to vector<16x1xf32>
    %42 = arith.divf %40, %41 : vector<16x1xf32>
    %43 = vector.broadcast %42 : vector<16x1xf32> to vector<16x64xf32>
    %44 = arith.subf %36, %43 : vector<16x64xf32>
    %45 = arith.mulf %44, %44 : vector<16x64xf32>
    %cst_26 = arith.constant dense<0.000000e+00> : vector<16xf32>
    %46 = vector.multi_reduction <add>, %45, %cst_26 [1] : vector<16x64xf32> to vector<16xf32>
    %47 = vector.shape_cast %46 : vector<16xf32> to vector<16x1xf32>
    %cst_27 = arith.constant 6.400000e+01 : f32
    %48 = vector.broadcast %cst_27 : f32 to vector<16x1xf32>
    %49 = arith.divf %47, %48 : vector<16x1xf32>
    %50 = vector.broadcast %42 : vector<16x1xf32> to vector<16x64xf32>
    %51 = arith.subf %36, %50 : vector<16x64xf32>
    %cst_28 = arith.constant 9.99999974E-6 : f32
    %52 = vector.broadcast %cst_28 : f32 to vector<16x1xf32>
    %53 = arith.addf %49, %52 : vector<16x1xf32>
    %54 = math.rsqrt %53 : vector<16x1xf32>
    %55 = vector.broadcast %54 : vector<16x1xf32> to vector<16x64xf32>
    %56 = arith.mulf %51, %55 : vector<16x64xf32>
    %57 = vector.broadcast %37 : vector<1x64xf32> to vector<16x64xf32>
    %58 = arith.mulf %56, %57 : vector<16x64xf32>
    %59 = vector.broadcast %38 : vector<1x64xf32> to vector<16x64xf32>
    %60 = arith.addf %58, %59 : vector<16x64xf32>
    %cst_29 = arith.constant 0.000000e+00 : f32
    %61 = vector.broadcast %cst_29 : f32 to vector<16x64xf32>
    %62 = arith.maximumf %60, %61 : vector<16x64xf32>
    %c0_30 = arith.constant 0 : index
    %c0_31 = arith.constant 0 : index
    %63 = vector.load %arg9[%c0_30, %c0_31] : memref<64x128xf32, #tpu.memory_space<vmem>>, vector<64x128xf32>
    %cst_32 = arith.constant dense<0.000000e+00> : vector<16x128xf32>
    %64 = tpu.matmul %62, %63, %cst_32 {dimension_numbers = #tpu.dot_dimension_numbers<[1], [0], [0], [1], [0, 0, 1, 1], [], []>} : vector<16x64xf32>, vector<64x128xf32>, vector<16x128xf32> -> vector<16x128xf32>
    %c0_33 = arith.constant 0 : index
    %c0_34 = arith.constant 0 : index
    %65 = vector.load %arg11[%c0_33, %c0_34] : memref<1x128xf32, #tpu.memory_space<vmem>>, vector<1x128xf32>
    %66 = vector.broadcast %65 : vector<1x128xf32> to vector<16x128xf32>
    %67 = arith.addf %64, %66 : vector<16x128xf32>
    %c0_35 = arith.constant 0 : index
    %c0_36 = arith.constant 0 : index
    %68 = vector.load %arg10[%c0_35, %c0_36] : memref<32x128xf32, #tpu.memory_space<vmem>>, vector<32x128xf32>
    %cst_37 = arith.constant 0.000000e+00 : f32
    %69 = vector.broadcast %cst_37 : f32 to vector<2x32xf32>
    %cst_38 = arith.constant 0.000000e+00 : f32
    %70 = vector.broadcast %cst_38 : f32 to vector<2x32xf32>
    %71 = vector.extract_strided_slice %67 {offsets = [0, 0], sizes = [2, 128], strides = [1, 1]} : vector<16x128xf32> to vector<2x128xf32>
    %cst_39 = arith.constant dense<0.000000e+00> : vector<2x128xf32>
    %72 = tpu.matmul %69, %68, %cst_39 {dimension_numbers = #tpu.dot_dimension_numbers<[1], [0], [0], [1], [0, 0, 1, 1], [], []>} : vector<2x32xf32>, vector<32x128xf32>, vector<2x128xf32> -> vector<2x128xf32>
    %73 = arith.addf %71, %72 : vector<2x128xf32>
    %74 = arith.negf %73 : vector<2x128xf32>
    %75 = math.exp %74 : vector<2x128xf32>
    %cst_40 = arith.constant 1.000000e+00 : f32
    %76 = vector.broadcast %cst_40 : f32 to vector<2x128xf32>
    %77 = arith.addf %76, %75 : vector<2x128xf32>
    %78 = arith.divf %76, %77 : vector<2x128xf32>
    %79 = math.tanh %73 : vector<2x128xf32>
    %80 = vector.extract_strided_slice %78 {offsets = [0, 0], sizes = [2, 32], strides = [1, 1]} : vector<2x128xf32> to vector<2x32xf32>
    %81 = vector.extract_strided_slice %78 {offsets = [0, 32], sizes = [2, 32], strides = [1, 1]} : vector<2x128xf32> to vector<2x32xf32>
    %82 = vector.extract_strided_slice %79 {offsets = [0, 64], sizes = [2, 32], strides = [1, 1]} : vector<2x128xf32> to vector<2x32xf32>
    %83 = vector.extract_strided_slice %78 {offsets = [0, 96], sizes = [2, 32], strides = [1, 1]} : vector<2x128xf32> to vector<2x32xf32>
    %84 = arith.mulf %81, %70 : vector<2x32xf32>
    %85 = arith.mulf %80, %82 : vector<2x32xf32>
    %86 = arith.addf %84, %85 : vector<2x32xf32>
    %87 = math.tanh %86 : vector<2x32xf32>
    %88 = arith.mulf %83, %87 : vector<2x32xf32>
    %c0_41 = arith.constant 0 : index
    %c0_42 = arith.constant 0 : index
    %c0_43 = arith.constant 0 : index
    %89 = vector.load %arg23[%c0_41, %c0_42, %c0_43] : memref<8x2x32xf32, #tpu.memory_space<vmem>>, vector<1x2x32xf32>
    %90 = vector.shape_cast %89 : vector<1x2x32xf32> to vector<2x32xf32>
    %91 = vector.shape_cast %88 : vector<2x32xf32> to vector<1x2x32xf32>
    tpu.vector_store %arg23[%c0_41, %c0_42, %c0_43], %91 {strides = array<i32>} : memref<8x2x32xf32, #tpu.memory_space<vmem>>, vector<1x2x32xf32>,
    %c0_44 = arith.constant 0 : index
    %c0_45 = arith.constant 0 : index
    %92 = vector.load %arg25[%c0_44, %c0_45] : memref<16x32xf32, #tpu.memory_space<vmem>>, vector<2x32xf32>
    tpu.vector_store %arg25[%c0_44, %c0_45], %88 {strides = array<i32>} : memref<16x32xf32, #tpu.memory_space<vmem>>, vector<2x32xf32>,
    %93 = vector.extract_strided_slice %67 {offsets = [2, 0], sizes = [2, 128], strides = [1, 1]} : vector<16x128xf32> to vector<2x128xf32>
    %cst_46 = arith.constant dense<0.000000e+00> : vector<2x128xf32>
    %94 = tpu.matmul %88, %68, %cst_46 {dimension_numbers = #tpu.dot_dimension_numbers<[1], [0], [0], [1], [0, 0, 1, 1], [], []>} : vector<2x32xf32>, vector<32x128xf32>, vector<2x128xf32> -> vector<2x128xf32>
    %95 = arith.addf %93, %94 : vector<2x128xf32>
    %96 = arith.negf %95 : vector<2x128xf32>
    %97 = math.exp %96 : vector<2x128xf32>
    %cst_47 = arith.constant 1.000000e+00 : f32
    %98 = vector.broadcast %cst_47 : f32 to vector<2x128xf32>
    %99 = arith.addf %98, %97 : vector<2x128xf32>
    %100 = arith.divf %98, %99 : vector<2x128xf32>
    %101 = math.tanh %95 : vector<2x128xf32>
    %102 = vector.extract_strided_slice %100 {offsets = [0, 0], sizes = [2, 32], strides = [1, 1]} : vector<2x128xf32> to vector<2x32xf32>
    %103 = vector.extract_strided_slice %100 {offsets = [0, 32], sizes = [2, 32], strides = [1, 1]} : vector<2x128xf32> to vector<2x32xf32>
    %104 = vector.extract_strided_slice %101 {offsets = [0, 64], sizes = [2, 32], strides = [1, 1]} : vector<2x128xf32> to vector<2x32xf32>
    %105 = vector.extract_strided_slice %100 {offsets = [0, 96], sizes = [2, 32], strides = [1, 1]} : vector<2x128xf32> to vector<2x32xf32>
    %106 = arith.mulf %103, %86 : vector<2x32xf32>
    %107 = arith.mulf %102, %104 : vector<2x32xf32>
    %108 = arith.addf %106, %107 : vector<2x32xf32>
    %109 = math.tanh %108 : vector<2x32xf32>
    %110 = arith.mulf %105, %109 : vector<2x32xf32>
    %c1 = arith.constant 1 : index
    %c0_48 = arith.constant 0 : index
    %c0_49 = arith.constant 0 : index
    %111 = vector.load %arg23[%c1, %c0_48, %c0_49] : memref<8x2x32xf32, #tpu.memory_space<vmem>>, vector<1x2x32xf32>
    %112 = vector.shape_cast %111 : vector<1x2x32xf32> to vector<2x32xf32>
    %113 = vector.shape_cast %110 : vector<2x32xf32> to vector<1x2x32xf32>
    tpu.vector_store %arg23[%c1, %c0_48, %c0_49], %113 {strides = array<i32>} : memref<8x2x32xf32, #tpu.memory_space<vmem>>, vector<1x2x32xf32>,
    %c2 = arith.constant 2 : index
    %c0_50 = arith.constant 0 : index
    %114 = vector.load %arg25[%c2, %c0_50] : memref<16x32xf32, #tpu.memory_space<vmem>>, vector<2x32xf32>
    tpu.vector_store %arg25[%c2, %c0_50], %110 {strides = array<i32>} : memref<16x32xf32, #tpu.memory_space<vmem>>, vector<2x32xf32>,
    %115 = vector.extract_strided_slice %67 {offsets = [4, 0], sizes = [2, 128], strides = [1, 1]} : vector<16x128xf32> to vector<2x128xf32>
    %cst_51 = arith.constant dense<0.000000e+00> : vector<2x128xf32>
    %116 = tpu.matmul %110, %68, %cst_51 {dimension_numbers = #tpu.dot_dimension_numbers<[1], [0], [0], [1], [0, 0, 1, 1], [], []>} : vector<2x32xf32>, vector<32x128xf32>, vector<2x128xf32> -> vector<2x128xf32>
    %117 = arith.addf %115, %116 : vector<2x128xf32>
    %118 = arith.negf %117 : vector<2x128xf32>
    %119 = math.exp %118 : vector<2x128xf32>
    %cst_52 = arith.constant 1.000000e+00 : f32
    %120 = vector.broadcast %cst_52 : f32 to vector<2x128xf32>
    %121 = arith.addf %120, %119 : vector<2x128xf32>
    %122 = arith.divf %120, %121 : vector<2x128xf32>
    %123 = math.tanh %117 : vector<2x128xf32>
    %124 = vector.extract_strided_slice %122 {offsets = [0, 0], sizes = [2, 32], strides = [1, 1]} : vector<2x128xf32> to vector<2x32xf32>
    %125 = vector.extract_strided_slice %122 {offsets = [0, 32], sizes = [2, 32], strides = [1, 1]} : vector<2x128xf32> to vector<2x32xf32>
    %126 = vector.extract_strided_slice %123 {offsets = [0, 64], sizes = [2, 32], strides = [1, 1]} : vector<2x128xf32> to vector<2x32xf32>
    %127 = vector.extract_strided_slice %122 {offsets = [0, 96], sizes = [2, 32], strides = [1, 1]} : vector<2x128xf32> to vector<2x32xf32>
    %128 = arith.mulf %125, %108 : vector<2x32xf32>
    %129 = arith.mulf %124, %126 : vector<2x32xf32>
    %130 = arith.addf %128, %129 : vector<2x32xf32>
    %131 = math.tanh %130 : vector<2x32xf32>
    %132 = arith.mulf %127, %131 : vector<2x32xf32>
    %c2_53 = arith.constant 2 : index
    %c0_54 = arith.constant 0 : index
    %c0_55 = arith.constant 0 : index
    %133 = vector.load %arg23[%c2_53, %c0_54, %c0_55] : memref<8x2x32xf32, #tpu.memory_space<vmem>>, vector<1x2x32xf32>
    %134 = vector.shape_cast %133 : vector<1x2x32xf32> to vector<2x32xf32>
    %135 = vector.shape_cast %132 : vector<2x32xf32> to vector<1x2x32xf32>
    tpu.vector_store %arg23[%c2_53, %c0_54, %c0_55], %135 {strides = array<i32>} : memref<8x2x32xf32, #tpu.memory_space<vmem>>, vector<1x2x32xf32>,
    %c4 = arith.constant 4 : index
    %c0_56 = arith.constant 0 : index
    %136 = vector.load %arg25[%c4, %c0_56] : memref<16x32xf32, #tpu.memory_space<vmem>>, vector<2x32xf32>
    tpu.vector_store %arg25[%c4, %c0_56], %132 {strides = array<i32>} : memref<16x32xf32, #tpu.memory_space<vmem>>, vector<2x32xf32>,
    %137 = vector.extract_strided_slice %67 {offsets = [6, 0], sizes = [2, 128], strides = [1, 1]} : vector<16x128xf32> to vector<2x128xf32>
    %cst_57 = arith.constant dense<0.000000e+00> : vector<2x128xf32>
    %138 = tpu.matmul %132, %68, %cst_57 {dimension_numbers = #tpu.dot_dimension_numbers<[1], [0], [0], [1], [0, 0, 1, 1], [], []>} : vector<2x32xf32>, vector<32x128xf32>, vector<2x128xf32> -> vector<2x128xf32>
    %139 = arith.addf %137, %138 : vector<2x128xf32>
    %140 = arith.negf %139 : vector<2x128xf32>
    %141 = math.exp %140 : vector<2x128xf32>
    %cst_58 = arith.constant 1.000000e+00 : f32
    %142 = vector.broadcast %cst_58 : f32 to vector<2x128xf32>
    %143 = arith.addf %142, %141 : vector<2x128xf32>
    %144 = arith.divf %142, %143 : vector<2x128xf32>
    %145 = math.tanh %139 : vector<2x128xf32>
    %146 = vector.extract_strided_slice %144 {offsets = [0, 0], sizes = [2, 32], strides = [1, 1]} : vector<2x128xf32> to vector<2x32xf32>
    %147 = vector.extract_strided_slice %144 {offsets = [0, 32], sizes = [2, 32], strides = [1, 1]} : vector<2x128xf32> to vector<2x32xf32>
    %148 = vector.extract_strided_slice %145 {offsets = [0, 64], sizes = [2, 32], strides = [1, 1]} : vector<2x128xf32> to vector<2x32xf32>
    %149 = vector.extract_strided_slice %144 {offsets = [0, 96], sizes = [2, 32], strides = [1, 1]} : vector<2x128xf32> to vector<2x32xf32>
    %150 = arith.mulf %147, %130 : vector<2x32xf32>
    %151 = arith.mulf %146, %148 : vector<2x32xf32>
    %152 = arith.addf %150, %151 : vector<2x32xf32>
    %153 = math.tanh %152 : vector<2x32xf32>
    %154 = arith.mulf %149, %153 : vector<2x32xf32>
    %c3 = arith.constant 3 : index
    %c0_59 = arith.constant 0 : index
    %c0_60 = arith.constant 0 : index
    %155 = vector.load %arg23[%c3, %c0_59, %c0_60] : memref<8x2x32xf32, #tpu.memory_space<vmem>>, vector<1x2x32xf32>
    %156 = vector.shape_cast %155 : vector<1x2x32xf32> to vector<2x32xf32>
    %157 = vector.shape_cast %154 : vector<2x32xf32> to vector<1x2x32xf32>
    tpu.vector_store %arg23[%c3, %c0_59, %c0_60], %157 {strides = array<i32>} : memref<8x2x32xf32, #tpu.memory_space<vmem>>, vector<1x2x32xf32>,
    %c6 = arith.constant 6 : index
    %c0_61 = arith.constant 0 : index
    %158 = vector.load %arg25[%c6, %c0_61] : memref<16x32xf32, #tpu.memory_space<vmem>>, vector<2x32xf32>
    tpu.vector_store %arg25[%c6, %c0_61], %154 {strides = array<i32>} : memref<16x32xf32, #tpu.memory_space<vmem>>, vector<2x32xf32>,
    %159 = vector.extract_strided_slice %67 {offsets = [8, 0], sizes = [2, 128], strides = [1, 1]} : vector<16x128xf32> to vector<2x128xf32>
    %cst_62 = arith.constant dense<0.000000e+00> : vector<2x128xf32>
    %160 = tpu.matmul %154, %68, %cst_62 {dimension_numbers = #tpu.dot_dimension_numbers<[1], [0], [0], [1], [0, 0, 1, 1], [], []>} : vector<2x32xf32>, vector<32x128xf32>, vector<2x128xf32> -> vector<2x128xf32>
    %161 = arith.addf %159, %160 : vector<2x128xf32>
    %162 = arith.negf %161 : vector<2x128xf32>
    %163 = math.exp %162 : vector<2x128xf32>
    %cst_63 = arith.constant 1.000000e+00 : f32
    %164 = vector.broadcast %cst_63 : f32 to vector<2x128xf32>
    %165 = arith.addf %164, %163 : vector<2x128xf32>
    %166 = arith.divf %164, %165 : vector<2x128xf32>
    %167 = math.tanh %161 : vector<2x128xf32>
    %168 = vector.extract_strided_slice %166 {offsets = [0, 0], sizes = [2, 32], strides = [1, 1]} : vector<2x128xf32> to vector<2x32xf32>
    %169 = vector.extract_strided_slice %166 {offsets = [0, 32], sizes = [2, 32], strides = [1, 1]} : vector<2x128xf32> to vector<2x32xf32>
    %170 = vector.extract_strided_slice %167 {offsets = [0, 64], sizes = [2, 32], strides = [1, 1]} : vector<2x128xf32> to vector<2x32xf32>
    %171 = vector.extract_strided_slice %166 {offsets = [0, 96], sizes = [2, 32], strides = [1, 1]} : vector<2x128xf32> to vector<2x32xf32>
    %172 = arith.mulf %169, %152 : vector<2x32xf32>
    %173 = arith.mulf %168, %170 : vector<2x32xf32>
    %174 = arith.addf %172, %173 : vector<2x32xf32>
    %175 = math.tanh %174 : vector<2x32xf32>
    %176 = arith.mulf %171, %175 : vector<2x32xf32>
    %c4_64 = arith.constant 4 : index
    %c0_65 = arith.constant 0 : index
    %c0_66 = arith.constant 0 : index
    %177 = vector.load %arg23[%c4_64, %c0_65, %c0_66] : memref<8x2x32xf32, #tpu.memory_space<vmem>>, vector<1x2x32xf32>
    %178 = vector.shape_cast %177 : vector<1x2x32xf32> to vector<2x32xf32>
    %179 = vector.shape_cast %176 : vector<2x32xf32> to vector<1x2x32xf32>
    tpu.vector_store %arg23[%c4_64, %c0_65, %c0_66], %179 {strides = array<i32>} : memref<8x2x32xf32, #tpu.memory_space<vmem>>, vector<1x2x32xf32>,
    %c8 = arith.constant 8 : index
    %c0_67 = arith.constant 0 : index
    %180 = vector.load %arg25[%c8, %c0_67] : memref<16x32xf32, #tpu.memory_space<vmem>>, vector<2x32xf32>
    tpu.vector_store %arg25[%c8, %c0_67], %176 {strides = array<i32>} : memref<16x32xf32, #tpu.memory_space<vmem>>, vector<2x32xf32>,
    %181 = vector.extract_strided_slice %67 {offsets = [10, 0], sizes = [2, 128], strides = [1, 1]} : vector<16x128xf32> to vector<2x128xf32>
    %cst_68 = arith.constant dense<0.000000e+00> : vector<2x128xf32>
    %182 = tpu.matmul %176, %68, %cst_68 {dimension_numbers = #tpu.dot_dimension_numbers<[1], [0], [0], [1], [0, 0, 1, 1], [], []>} : vector<2x32xf32>, vector<32x128xf32>, vector<2x128xf32> -> vector<2x128xf32>
    %183 = arith.addf %181, %182 : vector<2x128xf32>
    %184 = arith.negf %183 : vector<2x128xf32>
    %185 = math.exp %184 : vector<2x128xf32>
    %cst_69 = arith.constant 1.000000e+00 : f32
    %186 = vector.broadcast %cst_69 : f32 to vector<2x128xf32>
    %187 = arith.addf %186, %185 : vector<2x128xf32>
    %188 = arith.divf %186, %187 : vector<2x128xf32>
    %189 = math.tanh %183 : vector<2x128xf32>
    %190 = vector.extract_strided_slice %188 {offsets = [0, 0], sizes = [2, 32], strides = [1, 1]} : vector<2x128xf32> to vector<2x32xf32>
    %191 = vector.extract_strided_slice %188 {offsets = [0, 32], sizes = [2, 32], strides = [1, 1]} : vector<2x128xf32> to vector<2x32xf32>
    %192 = vector.extract_strided_slice %189 {offsets = [0, 64], sizes = [2, 32], strides = [1, 1]} : vector<2x128xf32> to vector<2x32xf32>
    %193 = vector.extract_strided_slice %188 {offsets = [0, 96], sizes = [2, 32], strides = [1, 1]} : vector<2x128xf32> to vector<2x32xf32>
    %194 = arith.mulf %191, %174 : vector<2x32xf32>
    %195 = arith.mulf %190, %192 : vector<2x32xf32>
    %196 = arith.addf %194, %195 : vector<2x32xf32>
    %197 = math.tanh %196 : vector<2x32xf32>
    %198 = arith.mulf %193, %197 : vector<2x32xf32>
    %c5 = arith.constant 5 : index
    %c0_70 = arith.constant 0 : index
    %c0_71 = arith.constant 0 : index
    %199 = vector.load %arg23[%c5, %c0_70, %c0_71] : memref<8x2x32xf32, #tpu.memory_space<vmem>>, vector<1x2x32xf32>
    %200 = vector.shape_cast %199 : vector<1x2x32xf32> to vector<2x32xf32>
    %201 = vector.shape_cast %198 : vector<2x32xf32> to vector<1x2x32xf32>
    tpu.vector_store %arg23[%c5, %c0_70, %c0_71], %201 {strides = array<i32>} : memref<8x2x32xf32, #tpu.memory_space<vmem>>, vector<1x2x32xf32>,
    %c10 = arith.constant 10 : index
    %c0_72 = arith.constant 0 : index
    %202 = vector.load %arg25[%c10, %c0_72] : memref<16x32xf32, #tpu.memory_space<vmem>>, vector<2x32xf32>
    tpu.vector_store %arg25[%c10, %c0_72], %198 {strides = array<i32>} : memref<16x32xf32, #tpu.memory_space<vmem>>, vector<2x32xf32>,
    %203 = vector.extract_strided_slice %67 {offsets = [12, 0], sizes = [2, 128], strides = [1, 1]} : vector<16x128xf32> to vector<2x128xf32>
    %cst_73 = arith.constant dense<0.000000e+00> : vector<2x128xf32>
    %204 = tpu.matmul %198, %68, %cst_73 {dimension_numbers = #tpu.dot_dimension_numbers<[1], [0], [0], [1], [0, 0, 1, 1], [], []>} : vector<2x32xf32>, vector<32x128xf32>, vector<2x128xf32> -> vector<2x128xf32>
    %205 = arith.addf %203, %204 : vector<2x128xf32>
    %206 = arith.negf %205 : vector<2x128xf32>
    %207 = math.exp %206 : vector<2x128xf32>
    %cst_74 = arith.constant 1.000000e+00 : f32
    %208 = vector.broadcast %cst_74 : f32 to vector<2x128xf32>
    %209 = arith.addf %208, %207 : vector<2x128xf32>
    %210 = arith.divf %208, %209 : vector<2x128xf32>
    %211 = math.tanh %205 : vector<2x128xf32>
    %212 = vector.extract_strided_slice %210 {offsets = [0, 0], sizes = [2, 32], strides = [1, 1]} : vector<2x128xf32> to vector<2x32xf32>
    %213 = vector.extract_strided_slice %210 {offsets = [0, 32], sizes = [2, 32], strides = [1, 1]} : vector<2x128xf32> to vector<2x32xf32>
    %214 = vector.extract_strided_slice %211 {offsets = [0, 64], sizes = [2, 32], strides = [1, 1]} : vector<2x128xf32> to vector<2x32xf32>
    %215 = vector.extract_strided_slice %210 {offsets = [0, 96], sizes = [2, 32], strides = [1, 1]} : vector<2x128xf32> to vector<2x32xf32>
    %216 = arith.mulf %213, %196 : vector<2x32xf32>
    %217 = arith.mulf %212, %214 : vector<2x32xf32>
    %218 = arith.addf %216, %217 : vector<2x32xf32>
    %219 = math.tanh %218 : vector<2x32xf32>
    %220 = arith.mulf %215, %219 : vector<2x32xf32>
    %c6_75 = arith.constant 6 : index
    %c0_76 = arith.constant 0 : index
    %c0_77 = arith.constant 0 : index
    %221 = vector.load %arg23[%c6_75, %c0_76, %c0_77] : memref<8x2x32xf32, #tpu.memory_space<vmem>>, vector<1x2x32xf32>
    %222 = vector.shape_cast %221 : vector<1x2x32xf32> to vector<2x32xf32>
    %223 = vector.shape_cast %220 : vector<2x32xf32> to vector<1x2x32xf32>
    tpu.vector_store %arg23[%c6_75, %c0_76, %c0_77], %223 {strides = array<i32>} : memref<8x2x32xf32, #tpu.memory_space<vmem>>, vector<1x2x32xf32>,
    %c12 = arith.constant 12 : index
    %c0_78 = arith.constant 0 : index
    %224 = vector.load %arg25[%c12, %c0_78] : memref<16x32xf32, #tpu.memory_space<vmem>>, vector<2x32xf32>
    tpu.vector_store %arg25[%c12, %c0_78], %220 {strides = array<i32>} : memref<16x32xf32, #tpu.memory_space<vmem>>, vector<2x32xf32>,
    %225 = vector.extract_strided_slice %67 {offsets = [14, 0], sizes = [2, 128], strides = [1, 1]} : vector<16x128xf32> to vector<2x128xf32>
    %cst_79 = arith.constant dense<0.000000e+00> : vector<2x128xf32>
    %226 = tpu.matmul %220, %68, %cst_79 {dimension_numbers = #tpu.dot_dimension_numbers<[1], [0], [0], [1], [0, 0, 1, 1], [], []>} : vector<2x32xf32>, vector<32x128xf32>, vector<2x128xf32> -> vector<2x128xf32>
    %227 = arith.addf %225, %226 : vector<2x128xf32>
    %228 = arith.negf %227 : vector<2x128xf32>
    %229 = math.exp %228 : vector<2x128xf32>
    %cst_80 = arith.constant 1.000000e+00 : f32
    %230 = vector.broadcast %cst_80 : f32 to vector<2x128xf32>
    %231 = arith.addf %230, %229 : vector<2x128xf32>
    %232 = arith.divf %230, %231 : vector<2x128xf32>
    %233 = math.tanh %227 : vector<2x128xf32>
    %234 = vector.extract_strided_slice %232 {offsets = [0, 0], sizes = [2, 32], strides = [1, 1]} : vector<2x128xf32> to vector<2x32xf32>
    %235 = vector.extract_strided_slice %232 {offsets = [0, 32], sizes = [2, 32], strides = [1, 1]} : vector<2x128xf32> to vector<2x32xf32>
    %236 = vector.extract_strided_slice %233 {offsets = [0, 64], sizes = [2, 32], strides = [1, 1]} : vector<2x128xf32> to vector<2x32xf32>
    %237 = vector.extract_strided_slice %232 {offsets = [0, 96], sizes = [2, 32], strides = [1, 1]} : vector<2x128xf32> to vector<2x32xf32>
    %238 = arith.mulf %235, %218 : vector<2x32xf32>
    %239 = arith.mulf %234, %236 : vector<2x32xf32>
    %240 = arith.addf %238, %239 : vector<2x32xf32>
    %241 = math.tanh %240 : vector<2x32xf32>
    %242 = arith.mulf %237, %241 : vector<2x32xf32>
    %c7 = arith.constant 7 : index
    %c0_81 = arith.constant 0 : index
    %c0_82 = arith.constant 0 : index
    %243 = vector.load %arg23[%c7, %c0_81, %c0_82] : memref<8x2x32xf32, #tpu.memory_space<vmem>>, vector<1x2x32xf32>
    %244 = vector.shape_cast %243 : vector<1x2x32xf32> to vector<2x32xf32>
    %245 = vector.shape_cast %242 : vector<2x32xf32> to vector<1x2x32xf32>
    tpu.vector_store %arg23[%c7, %c0_81, %c0_82], %245 {strides = array<i32>} : memref<8x2x32xf32, #tpu.memory_space<vmem>>, vector<1x2x32xf32>,
    %c14 = arith.constant 14 : index
    %c0_83 = arith.constant 0 : index
    %246 = vector.load %arg25[%c14, %c0_83] : memref<16x32xf32, #tpu.memory_space<vmem>>, vector<2x32xf32>
    tpu.vector_store %arg25[%c14, %c0_83], %242 {strides = array<i32>} : memref<16x32xf32, #tpu.memory_space<vmem>>, vector<2x32xf32>,
    %c0_84 = arith.constant 0 : index
    %c0_85 = arith.constant 0 : index
    %247 = vector.load %arg25[%c0_84, %c0_85] : memref<16x32xf32, #tpu.memory_space<vmem>>, vector<16x32xf32>
    %c0_86 = arith.constant 0 : index
    %c0_87 = arith.constant 0 : index
    %248 = vector.load %arg12[%c0_86, %c0_87] : memref<32x128xf32, #tpu.memory_space<vmem>>, vector<32x128xf32>
    %cst_88 = arith.constant dense<0.000000e+00> : vector<16x128xf32>
    %249 = tpu.matmul %247, %248, %cst_88 {dimension_numbers = #tpu.dot_dimension_numbers<[1], [0], [0], [1], [0, 0, 1, 1], [], []>} : vector<16x32xf32>, vector<32x128xf32>, vector<16x128xf32> -> vector<16x128xf32>
    %c0_89 = arith.constant 0 : index
    %c0_90 = arith.constant 0 : index
    %250 = vector.load %arg13[%c0_89, %c0_90] : memref<64x128xf32, #tpu.memory_space<vmem>>, vector<64x128xf32>
    %cst_91 = arith.constant dense<0.000000e+00> : vector<16x128xf32>
    %251 = tpu.matmul %62, %250, %cst_91 {dimension_numbers = #tpu.dot_dimension_numbers<[1], [0], [0], [1], [0, 0, 1, 1], [], []>} : vector<16x64xf32>, vector<64x128xf32>, vector<16x128xf32> -> vector<16x128xf32>
    %252 = arith.addf %249, %251 : vector<16x128xf32>
    %c0_92 = arith.constant 0 : index
    %c0_93 = arith.constant 0 : index
    %253 = vector.load %arg14[%c0_92, %c0_93] : memref<1x128xf32, #tpu.memory_space<vmem>>, vector<1x128xf32>
    %254 = vector.broadcast %253 : vector<1x128xf32> to vector<16x128xf32>
    %255 = arith.addf %252, %254 : vector<16x128xf32>
    %c0_94 = arith.constant 0 : index
    %c0_95 = arith.constant 0 : index
    %256 = vector.load %arg15[%c0_94, %c0_95] : memref<1x128xf32, #tpu.memory_space<vmem>>, vector<1x128xf32>
    %c0_96 = arith.constant 0 : index
    %c0_97 = arith.constant 0 : index
    %257 = vector.load %arg16[%c0_96, %c0_97] : memref<1x128xf32, #tpu.memory_space<vmem>>, vector<1x128xf32>
    %cst_98 = arith.constant dense<0.000000e+00> : vector<16xf32>
    %258 = vector.multi_reduction <add>, %255, %cst_98 [1] : vector<16x128xf32> to vector<16xf32>
    %259 = vector.shape_cast %258 : vector<16xf32> to vector<16x1xf32>
    %cst_99 = arith.constant 1.280000e+02 : f32
    %260 = vector.broadcast %cst_99 : f32 to vector<16x1xf32>
    %261 = arith.divf %259, %260 : vector<16x1xf32>
    %262 = vector.broadcast %261 : vector<16x1xf32> to vector<16x128xf32>
    %263 = arith.subf %255, %262 : vector<16x128xf32>
    %264 = arith.mulf %263, %263 : vector<16x128xf32>
    %cst_100 = arith.constant dense<0.000000e+00> : vector<16xf32>
    %265 = vector.multi_reduction <add>, %264, %cst_100 [1] : vector<16x128xf32> to vector<16xf32>
    %266 = vector.shape_cast %265 : vector<16xf32> to vector<16x1xf32>
    %cst_101 = arith.constant 1.280000e+02 : f32
    %267 = vector.broadcast %cst_101 : f32 to vector<16x1xf32>
    %268 = arith.divf %266, %267 : vector<16x1xf32>
    %269 = vector.broadcast %261 : vector<16x1xf32> to vector<16x128xf32>
    %270 = arith.subf %255, %269 : vector<16x128xf32>
    %cst_102 = arith.constant 9.99999974E-6 : f32
    %271 = vector.broadcast %cst_102 : f32 to vector<16x1xf32>
    %272 = arith.addf %268, %271 : vector<16x1xf32>
    %273 = math.rsqrt %272 : vector<16x1xf32>
    %274 = vector.broadcast %273 : vector<16x1xf32> to vector<16x128xf32>
    %275 = arith.mulf %270, %274 : vector<16x128xf32>
    %276 = vector.broadcast %256 : vector<1x128xf32> to vector<16x128xf32>
    %277 = arith.mulf %275, %276 : vector<16x128xf32>
    %278 = vector.broadcast %257 : vector<1x128xf32> to vector<16x128xf32>
    %279 = arith.addf %277, %278 : vector<16x128xf32>
    %cst_103 = arith.constant 0.000000e+00 : f32
    %280 = vector.broadcast %cst_103 : f32 to vector<16x128xf32>
    %281 = arith.maximumf %279, %280 : vector<16x128xf32>
    %c0_104 = arith.constant 0 : index
    %c0_105 = arith.constant 0 : index
    %282 = vector.load %arg17[%c0_104, %c0_105] : memref<128x64xf32, #tpu.memory_space<vmem>>, vector<128x64xf32>
    %cst_106 = arith.constant dense<0.000000e+00> : vector<16x64xf32>
    %283 = tpu.matmul %281, %282, %cst_106 {dimension_numbers = #tpu.dot_dimension_numbers<[1], [0], [0], [1], [0, 0, 1, 1], [], []>} : vector<16x128xf32>, vector<128x64xf32>, vector<16x64xf32> -> vector<16x64xf32>
    %c0_107 = arith.constant 0 : index
    %c0_108 = arith.constant 0 : index
    %284 = vector.load %arg18[%c0_107, %c0_108] : memref<1x64xf32, #tpu.memory_space<vmem>>, vector<1x64xf32>
    %285 = vector.broadcast %284 : vector<1x64xf32> to vector<16x64xf32>
    %286 = arith.addf %283, %285 : vector<16x64xf32>
    %c0_109 = arith.constant 0 : index
    %c0_110 = arith.constant 0 : index
    %287 = vector.load %arg19[%c0_109, %c0_110] : memref<1x64xf32, #tpu.memory_space<vmem>>, vector<1x64xf32>
    %c0_111 = arith.constant 0 : index
    %c0_112 = arith.constant 0 : index
    %288 = vector.load %arg20[%c0_111, %c0_112] : memref<1x64xf32, #tpu.memory_space<vmem>>, vector<1x64xf32>
    %cst_113 = arith.constant dense<0.000000e+00> : vector<16xf32>
    %289 = vector.multi_reduction <add>, %286, %cst_113 [1] : vector<16x64xf32> to vector<16xf32>
    %290 = vector.shape_cast %289 : vector<16xf32> to vector<16x1xf32>
    %cst_114 = arith.constant 6.400000e+01 : f32
    %291 = vector.broadcast %cst_114 : f32 to vector<16x1xf32>
    %292 = arith.divf %290, %291 : vector<16x1xf32>
    %293 = vector.broadcast %292 : vector<16x1xf32> to vector<16x64xf32>
    %294 = arith.subf %286, %293 : vector<16x64xf32>
    %295 = arith.mulf %294, %294 : vector<16x64xf32>
    %cst_115 = arith.constant dense<0.000000e+00> : vector<16xf32>
    %296 = vector.multi_reduction <add>, %295, %cst_115 [1] : vector<16x64xf32> to vector<16xf32>
    %297 = vector.shape_cast %296 : vector<16xf32> to vector<16x1xf32>
    %cst_116 = arith.constant 6.400000e+01 : f32
    %298 = vector.broadcast %cst_116 : f32 to vector<16x1xf32>
    %299 = arith.divf %297, %298 : vector<16x1xf32>
    %300 = vector.broadcast %292 : vector<16x1xf32> to vector<16x64xf32>
    %301 = arith.subf %286, %300 : vector<16x64xf32>
    %cst_117 = arith.constant 9.99999974E-6 : f32
    %302 = vector.broadcast %cst_117 : f32 to vector<16x1xf32>
    %303 = arith.addf %299, %302 : vector<16x1xf32>
    %304 = math.rsqrt %303 : vector<16x1xf32>
    %305 = vector.broadcast %304 : vector<16x1xf32> to vector<16x64xf32>
    %306 = arith.mulf %301, %305 : vector<16x64xf32>
    %307 = vector.broadcast %287 : vector<1x64xf32> to vector<16x64xf32>
    %308 = arith.mulf %306, %307 : vector<16x64xf32>
    %309 = vector.broadcast %288 : vector<1x64xf32> to vector<16x64xf32>
    %310 = arith.addf %308, %309 : vector<16x64xf32>
    %cst_118 = arith.constant 0.000000e+00 : f32
    %311 = vector.broadcast %cst_118 : f32 to vector<16x64xf32>
    %312 = arith.maximumf %310, %311 : vector<16x64xf32>
    %c0_119 = arith.constant 0 : index
    %c0_120 = arith.constant 0 : index
    %313 = vector.load %arg21[%c0_119, %c0_120] : memref<1x64xf32, #tpu.memory_space<vmem>>, vector<1x64xf32>
    %314 = vector.broadcast %313 : vector<1x64xf32> to vector<16x64xf32>
    %315 = arith.mulf %312, %314 : vector<16x64xf32>
    %cst_121 = arith.constant dense<0.000000e+00> : vector<16xf32>
    %316 = vector.multi_reduction <add>, %315, %cst_121 [1] : vector<16x64xf32> to vector<16xf32>
    %317 = vector.shape_cast %316 : vector<16xf32> to vector<16x1xf32>
    %c0_122 = arith.constant 0 : index
    %c0_123 = arith.constant 0 : index
    %318 = vector.load %arg22[%c0_122, %c0_123] : memref<1x1xf32, #tpu.memory_space<vmem>>, vector<1x1xf32>
    %319 = vector.broadcast %318 : vector<1x1xf32> to vector<16x1xf32>
    %320 = arith.addf %317, %319 : vector<16x1xf32>
    %c0_124 = arith.constant 0 : index
    %c0_125 = arith.constant 0 : index
    %321 = vector.load %arg24[%c0_124, %c0_125] : memref<16x1xf32, #tpu.memory_space<vmem>>, vector<16x1xf32>
    tpu.vector_store %arg24[%c0_124, %c0_125], %320 {strides = array<i32>} : memref<16x1xf32, #tpu.memory_space<vmem>>, vector<16x1xf32>,
    return
  }
}

</mosaic_0001>

<bundles_post_ra>
// kernel: csc_forward.1
= control target key start
LH: loop header
LB: loop body
LE: loop exit
PB: predicated region body
PF: predicated region fallthrough
CT: control target
= control target key end

     0   :  { %s2187_s0 = inlined_call_operand.vmem [shape: f32[16,16], index: 0, kind: input, shape index: {}]   ;;  %s2188_s1 = inlined_call_operand.hbm [shape: f32[16,64], index: 1, kind: input, shape index: {}]   ;;  %s2189_s2 = inlined_call_operand.vmem [shape: f32[1,64], index: 2, kind: input, shape index: {}]   ;;  %s2190_s3 = inlined_call_operand.vmem [shape: f32[1,64], index: 3, kind: input, shape index: {}]   ;;  %s2191_s4 = inlined_call_operand.vmem [shape: f32[1,64], index: 4, kind: input, shape index: {}]   ;;  %s2192_s5 = inlined_call_operand.vmem [shape: f32[64,64], index: 5, kind: input, shape index: {}]   ;;  %s2193_s6 = inlined_call_operand.hbm [shape: f32[1,64], index: 6, kind: input, shape index: {}]   ;;  %s2194_s7 = inlined_call_operand.vmem [shape: f32[1,64], index: 7, kind: input, shape index: {}]   ;;  %s2195_s8 = inlined_call_operand.vmem [shape: f32[1,64], index: 8, kind: input, shape index: {}]   ;;  %s2196_s9 = inlined_call_operand.vmem [shape: f32[64,128], index: 9, kind: input, shape index: {}]   ;;  %s2197_s10 = inlined_call_operand.vmem [shape: f32[32,128], index: 10, kind: input, shape index: {}]   ;;  %s2198_s11 = inlined_call_operand.hbm [shape: f32[1,128], index: 11, kind: input, shape index: {}]   ;;  %s2199_s12 = inlined_call_operand.hbm [shape: f32[32,128], index: 12, kind: input, shape index: {}]   ;;  %s2200_s13 = inlined_call_operand.vmem [shape: f32[64,128], index: 13, kind: input, shape index: {}]   ;;  %s2201_s14 = inlined_call_operand.vmem [shape: f32[1,128], index: 14, kind: input, shape index: {}]   ;;  %s2202_s15 = inlined_call_operand.vmem [shape: f32[1,128], index: 15, kind: input, shape index: {}]   ;;  %s2203_s16 = inlined_call_operand.vmem [shape: f32[1,128], index: 16, kind: input, shape index: {}]   ;;  %s2204_s17 = inlined_call_operand.vmem [shape: f32[128,64], index: 17, kind: input, shape index: {}]   ;;  %s2205_s18 = inlined_call_operand.hbm [shape: f32[1,64], index: 18, kind: input, shape index: {}]   ;;  %s2206_s19 = inlined_call_operand.hbm [shape: f32[1,64], index: 19, kind: input, shape index: {}]   ;;  %s2207_s20 = inlined_call_operand.hbm [shape: f32[1,64], index: 20, kind: input, shape index: {}]   ;;  %s2208_s21 = inlined_call_operand.hbm [shape: f32[1,64], index: 21, kind: input, shape index: {}]   ;;  %s2209_s22 = inlined_call_operand.<no memory space> [shape: f32[1,1], index: 22, kind: input, shape index: {}]   ;;  %s2210_s23 = inlined_call_operand.vmem [shape: f32[8,2,32], index: 23, kind: output, shape index: {0}]   ;;  %s2211_s24 = inlined_call_operand.vmem [shape: f32[16,1], index: 24, kind: output, shape index: {1}]  }
   0x1   :  { %2214 = sst [smem:[#allocation22_spill]] %s2187_s0  ;;  %v30_v0 = vstv %s2209_s22 }
   0x2   :  { %2215 = sst [smem:[#allocation23_spill]] %s2188_s1  ;;  %31 = vst [vmem:[#allocation3] sm:$0x1] %v30_v0 }
   0x3   :  { %2216 = sst [smem:[#allocation24_spill]] %s2189_s2 }
   0x4   :  { %2217 = sst [smem:[#allocation25_spill]] %s2190_s3 }
   0x5   :  { %2218 = sst [smem:[#allocation26_spill]] %s2191_s4 }
   0x6   :  { %2219 = sst [smem:[#allocation27_spill]] %s2192_s5 }
   0x7   :  { %2220 = sst [smem:[#allocation28_spill]] %s2193_s6 }
   0x8   :  { %2221 = sst [smem:[#allocation29_spill]] %s2194_s7 }
   0x9   :  { %2222 = sst [smem:[#allocation30_spill]] %s2195_s8 }
   0xa   :  { %32 = vsyncpa [#allocation5], 0 }
   0xb   :  { %33 = vsyncpa [#allocation7], 0 }
   0xc   :  { %34 = vsyncpa [#allocation10], 0 }
   0xd   :  { %35 = vsyncpa [#allocation13], 0  ;;  %s2223_s6 = sld [smem:[#allocation28_spill]] }
  0x13   :  { %s65_s2 = sshll.u32 %s2223_s6, 4  ;;  %s66_s2 = int_to_ptr.hbm [resolvable:$true] %s65_s2 }
  0x14   :  { %36 = vsyncpa [#allocation16], 0  ;;  %s1650_s29 = smov [#allocation6]   ;;  %s94_s3 = sshll.u32 %s2199_s12, 4  ;;  %s95_s3 = int_to_ptr.hbm [resolvable:$true] %s94_s3 }
  0x15   :  { %s67_s0 = sshll.u32 %s1650_s29, 4  ;;  %s1651_s22 = smov [#allocation9]   ;;  %s68_s0 = int_to_ptr.vmem [resolvable:$true] %s67_s0 }
  0x16   :  { %70 = dma.hbm_to_vmem [thread:$0]  %s66_s2, 16, %s68_s0, [#allocation7]  }
  0x17   :  { %s96_s25 = sshll.u32 %s1651_s22, 4  ;;  %s129_s1 = sshll.u32 %s2206_s19, 4  ;;  %s97_s25 = int_to_ptr.vmem [resolvable:$true] %s96_s25  ;;  %s130_s1 = int_to_ptr.hbm [resolvable:$true] %s129_s1 }
  0x18   :  { %s1652_s5 = smov 128   ;;  %s1653_s26 = smov 8  }
  0x19   :  { %102 = dma.hbm_to_vmem [thread:$0]  %s95_s3, 512, %s97_s25, [#allocation10], %s1652_s5, %s1652_s5, %s1653_s26  }
  0x1a   :  { %s2224_s6 = sld [smem:[#allocation23_spill]]  ;;  %s1654_s29 = smov [#allocation12]  }
  0x1b   :  { %s131_s0 = sshll.u32 %s1654_s29, 4  ;;  %s1655_s12 = smov [#allocation4]   ;;  %s132_s0 = int_to_ptr.vmem [resolvable:$true] %s131_s0 }
  0x1c   :  { %134 = dma.hbm_to_vmem [thread:$0]  %s130_s1, 16, %s132_s0, [#allocation13]  }
  0x1d   :  { %s45_s7 = sshll.u32 %s1655_s12, 4  ;;  %s84_s19 = sshll.u32 %s2198_s11, 4  ;;  %s46_s7 = int_to_ptr.vmem [resolvable:$true] %s45_s7  ;;  %s85_s19 = int_to_ptr.hbm [resolvable:$true] %s84_s19 }
  0x1e   :  { %s118_s25 = sshll.u32 %s2205_s18, 4  ;;  %s1656_s4 = smov [#allocation8]   ;;  %s119_s25 = int_to_ptr.hbm [resolvable:$true] %s118_s25 }
  0x1f   :  { %s86_s27 = sshll.u32 %s1656_s4, 4  ;;  %s1657_s28 = smov [#allocation11]   ;;  %s87_s27 = int_to_ptr.vmem [resolvable:$true] %s86_s27 }
  0x20   :  { %s43_s2 = sshll.u32 %s2224_s6, 4  ;;  %s120_s1 = sshll.u32 %s1657_s28, 4  ;;  %s44_s2 = int_to_ptr.hbm [resolvable:$true] %s43_s2  ;;  %s121_s1 = int_to_ptr.vmem [resolvable:$true] %s120_s1 }
  0x21   :  { %51 = dma.hbm_to_vmem [thread:$0]  %s44_s2, 256, %s46_s7, [#allocation5], %s1652_s5, %s1652_s5, %s1653_s26  }
  0x22   :  { %89 = dma.hbm_to_vmem [thread:$0]  %s85_s19, 16, %s87_s27, [#allocation7]  }
  0x23   :  { %s140_s0 = sshll.u32 %s2207_s20, 4  ;;  %s151_s26 = sshll.u32 %s2208_s21, 4  ;;  %s141_s0 = int_to_ptr.hbm [resolvable:$true] %s140_s0  ;;  %s152_s26 = int_to_ptr.hbm [resolvable:$true] %s151_s26 }
  0x24   :  { %123 = dma.hbm_to_vmem [thread:$0]  %s119_s25, 16, %s121_s1, [#allocation10]  }
  0x25   :  { %s1658_s2 = smov [#allocation14]   ;;  %s1659_s12 = smov [#allocation15]  }
  0x26   :  { %s142_s18 = sshll.u32 %s1658_s2, 4  ;;  %s153_s7 = sshll.u32 %s1659_s12, 4  ;;  %s143_s18 = int_to_ptr.vmem [resolvable:$true] %s142_s18  ;;  %s154_s7 = int_to_ptr.vmem [resolvable:$true] %s153_s7 }
  0x27   :  { %145 = dma.hbm_to_vmem [thread:$0]  %s141_s0, 16, %s143_s18, [#allocation13]  }
  0x28   :  { %156 = dma.hbm_to_vmem [thread:$0]  %s152_s26, 16, %s154_s7, [#allocation16]  }
  0x29   :  { %1640 = dma.done.wait [#allocation5], 256  }
  0x2a   :  { %1641 = vsyncadd [#allocation5], 4294967040 }
  0x2b   :  { %1642 = dma.done.wait [#allocation7], 32  }
  0x2c   :  { %1643 = vsyncadd [#allocation7], 4294967264 }
  0x2d   :  { %1644 = dma.done.wait [#allocation10], 528  }
  0x2e   :  { %1645 = vsyncadd [#allocation10], 4294966768 }
  0x2f   :  { %1646 = dma.done.wait [#allocation13], 32  }
  0x30   :  { %1647 = vsyncadd [#allocation13], 4294967264 }
  0x31   :  { %1648 = dma.done.wait [#allocation16], 16  }
  0x32   :  { %1649 = vsyncadd [#allocation16], 4294967280  ;;  %v194_v1 = vld [vmem:[#allocation4 + $0x8] sm:$0xff]  ;;  %v193_v2 = vld [vmem:[#allocation4] sm:$0xff]  ;;  %s2225_s30 = sld [smem:[#allocation22_spill]]  ;;  %vm199_vm0 = vcmask 130048  }
  0x33   :  { %220 = vmatpush.msra.mxu0 %v194_v1  ;;  %s2226_s25 = sld [smem:[#allocation24_spill]]  ;;  %vm231_vm1 = vcmask 523264   ;;  %v1660_v12 = vmov 64.0   ;;  %s1662_s11 = smov 64  }
  0x34   :  { %1364 = vrcp.f32 %v1660_v12  ;;  %s2227_s28 = sld [smem:[#allocation27_spill]]  ;;  %s1663_s5 = smov 32  }
  0x35   :  { %221 = vmatpush.msra.mxu0 %v193_v2  ;;  %s2228_s8 = sld [smem:[#allocation25_spill]] }
  0x36   :  { %s2229_s4 = sld [smem:[#allocation26_spill]] }
  0x37   :  { %s2230_s1 = sld [smem:[#allocation29_spill]] }
  0x38   :  { %v191_v3 = vld [vmem:[%s2225_s30] sm:$0xff]  ;;  %v192_v4 = vld [vmem:[%s2225_s30 + $0x8] sm:$0xff]  ;;  %s2231_s0 = sld [smem:[#allocation30_spill]] }
  0x39   :  { %1302 = vmatmul.msk.f32.vlgmr.msra.gmra.mxu0 %vm199_vm0, %v191_v3  ;;  %v1349_v5 = vld [vmem:[%s2226_s25] ss:$0 sm:$0xff]  ;;  %v1352_v3 = vld [vmem:[#allocation6] ss:$0 sm:$0xff] }
  0x3a   :  { %v1365_v13 = vpop.eup %1364  ;;  %v302_v29 = vld [vmem:[%s2227_s28 + $0x38] sm:$0xff]  ;;  %v301_v30 = vld [vmem:[%s2227_s28 + $0x30] sm:$0xff]  ;;  %v300_v31 = vld [vmem:[%s2227_s28 + $0x28] sm:$0xff] }
  0x3b   :  { %v239_v14 = vmul.f32 64.0, %v1365_v13  ;;  %vm243_vm2 = vweird.f32 %v1365_v13  ;;  %321 = vmatpush.msra.mxu1 %v302_v29  ;;  %v299_v32 = vld [vmem:[%s2227_s28 + $0x20] sm:$0xff]  ;;  %v298_v33 = vld [vmem:[%s2227_s28 + $0x18] sm:$0xff]  ;;  %v297_v34 = vld [vmem:[%s2227_s28 + $0x10] sm:$0xff] }
  0x3c   :  { %v296_v35 = vld [vmem:[%s2227_s28 + $0x8] sm:$0xff]  ;;  %v295_v36 = vld [vmem:[%s2227_s28] sm:$0xff]  ;;  %v1909_v29 = vld [vmem:[%s2197_s10 + $0x18] sm:$0xff] }
  0x3d   :  { %v240_v15 = vsub.f32 1.0, %v239_v14  ;;  %322 = vmatpush.msra.mxu1 %v301_v30  ;;  %v1350_v51 = vld [vmem:[%s2228_s8] ss:$0 sm:$0xff]  ;;  %v1914_v30 = vld [vmem:[%s2197_s10 + $0x10] sm:$0xff]  ;;  %599 = vmatpush.msrb.mxu0 %v1909_v29 }
  0x3e   :  { %v1351_v55 = vld [vmem:[%s2229_s4] ss:$0 sm:$0xff]  ;;  %899 = vmatpush.msra.mxu2 %v1909_v29 }
  0x3f   :  { %v241_v16 = vmul.f32 %v1365_v13, %v240_v15  ;;  %323 = vmatpush.msra.mxu1 %v300_v31  ;;  %600 = vmatpush.msrb.mxu0 %v1914_v30 }
  0x40   :  { %900 = vmatpush.msra.mxu2 %v1914_v30 }
  0x41   :  { %1303 = vmatmul.msk.f32.gmra.mxu0 %vm199_vm0, %v192_v4  ;;  %v242_v17 = vadd.f32 %v1365_v13, %v241_v16  ;;  %324 = vmatpush.msra.mxu1 %v299_v32 }
  0x43   :  { %v1828_v18 = vsel %vm243_vm2, %v1365_v13, %v242_v17  ;;  %325 = vmatpush.msra.mxu1 %v298_v33 }
  0x45   :  { %326 = vmatpush.msra.mxu1 %v297_v34  ;;  %v1928_v34 = vld [vmem:[%s2197_s10 + $0x8] sm:$0xff] }
  0x46   :  { %601 = vmatpush.msrb.mxu0 %v1928_v34  ;;  %901 = vmatpush.msra.mxu2 %v1928_v34 }
  0x47   :  { %327 = vmatpush.msra.mxu1 %v296_v35  ;;  %v1933_v35 = vld [vmem:[%s2197_s10] sm:$0xff] }
  0x48   :  { %602 = vmatpush.msrb.mxu0 %v1933_v35  ;;  %902 = vmatpush.msra.mxu2 %v1933_v35 }
  0x49   :  { %328 = vmatpush.msra.mxu1 %v295_v36 }
  0x4a   :  { %753 = vmatpush.msra.mxu0 %v1909_v29 }
  0x4b   :  { %823 = vmatpush.msrb.mxu1 %v1909_v29 }
  0x4c   :  { %754 = vmatpush.msra.mxu0 %v1914_v30 }
  0x4d   :  { %824 = vmatpush.msrb.mxu1 %v1914_v30 }
  0x4e   :  { %755 = vmatpush.msra.mxu0 %v1928_v34 }
  0x4f   :  { %825 = vmatpush.msrb.mxu1 %v1928_v34 }
  0x50   :  { %756 = vmatpush.msra.mxu0 %v1933_v35 }
  0x51   :  { %826 = vmatpush.msrb.mxu1 %v1933_v35 }
  0xb6   :  { %v223_v6 = vpop.f32.mrf.mxu0 }
  0xb7   :  { %v224_v7 = vadd.f32 %v1349_v5, %v223_v6 }
  0xb9   :  { %v232_v8 = vsel %vm231_vm1, %v224_v7, 0.0 }
  0xba   :  { %233 = vadd.xlane.f32.xlu0 %v232_v8 }
  0xbe   :  { %v226_v9 = vpop.f32.mrf.mxu0 }
  0xbf   :  { %v227_v10 = vadd.f32 %v1349_v5, %v226_v9 }
  0xc1   :  { %v235_v11 = vsel %vm231_vm1, %v227_v10, 0.0 }
  0xc2   :  { %236 = vadd.xlane.f32.xlu0 %v235_v11 }
 0x12d   :  { %v234_v19 = vpop.xlane.xlu0 %233 }
 0x12e   :  { %v245_v20 = vmul.f32 %v1828_v18, %v234_v19 }
 0x130   :  { %v247_v21 = vsub.f32 %v224_v7, %v245_v20 }
 0x132   :  { %v249_v22 = vmul.f32 %v247_v21, %v247_v21 }
 0x134   :  { %v251_v23 = vsel %vm231_vm1, %v249_v22, 0.0  ;;  %v400_v22 = vld [vmem:[%s2196_s9 + $0x30] sm:$0xff] }
 0x135   :  { %252 = vadd.xlane.f32.xlu1 %v251_v23  ;;  %v237_v24 = vpop.xlane.xlu0 %236  ;;  %v399_v23 = vld [vmem:[%s2196_s9 + $0x28] sm:$0xff] }
 0x136   :  { %v246_v25 = vmul.f32 %v1828_v18, %v237_v24  ;;  %v398_v24 = vld [vmem:[%s2196_s9 + $0x20] sm:$0xff] }
 0x138   :  { %v248_v26 = vsub.f32 %v227_v10, %v246_v25  ;;  %v397_v25 = vld [vmem:[%s2196_s9 + $0x18] sm:$0xff] }
 0x13a   :  { %v250_v27 = vmul.f32 %v248_v26, %v248_v26 }
 0x13c   :  { %v254_v28 = vsel %vm231_vm1, %v250_v27, 0.0  ;;  %v395_v27 = vld [vmem:[%s2196_s9 + $0x8] sm:$0xff] }
 0x13d   :  { %255 = vadd.xlane.f32.xlu1 %v254_v28  ;;  %v394_v28 = vld [vmem:[%s2196_s9] sm:$0xff] }
 0x1a8   :  { %v253_v37 = vpop.xlane.xlu1 %252 }
 0x1a9   :  { %v257_v38 = vmul.f32 %v253_v37, %v1828_v18 }
 0x1ab   :  { %v259_v39 = vadd.f32 1e-05, %v257_v38 }
 0x1ad   :  { %1366 = vrsqrt.f32 %v259_v39  ;;  %vm267_vm4 = vweird.f32 %v259_v39 }
 0x1b0   :  { %v256_v40 = vpop.xlane.xlu1 %255 }
 0x1b1   :  { %v258_v41 = vmul.f32 %v256_v40, %v1828_v18 }
 0x1b3   :  { %v1367_v42 = vpop.eup %1366  ;;  %v260_v43 = vadd.f32 1e-05, %v258_v41 }
 0x1b4   :  { %v262_v44 = vmul.f32 %v1367_v42, %v259_v39  ;;  %vm268_vm3 = vweird.f32 %v1367_v42 }
 0x1b5   :  { %1368 = vrsqrt.f32 %v260_v43  ;;  %vm269_vm5 = vmor %vm267_vm4, %vm268_vm3  ;;  %vm277_vm7 = vweird.f32 %v260_v43  ;;  %vm505_vm4 = vcmask 254976  }
 0x1b6   :  { %v263_v45 = vmul.f32 %v1367_v42, %v262_v44 }
 0x1b8   :  { %v264_v46 = vmul.f32 0.5, %v263_v45 }
 0x1ba   :  { %v265_v47 = vsub.f32 1.5, %v264_v46 }
 0x1bb   :  { %v1369_v48 = vpop.eup %1368 }
 0x1bc   :  { %v266_v49 = vmul.f32 %v1367_v42, %v265_v47  ;;  %v272_v50 = vmul.f32 %v1369_v48, %v260_v43  ;;  %vm278_vm6 = vweird.f32 %v1369_v48  ;;  %v1353_v47 = vld [vmem:[%s2230_s1] ss:$0 sm:$0xff] }
 0x1bd   :  { %vm279_vm8 = vmor %vm277_vm7, %vm278_vm6 }
 0x1be   :  { %v270_v52 = vsel %vm269_vm5, %v1367_v42, %v266_v49  ;;  %v273_v53 = vmul.f32 %v1369_v48, %v272_v50  ;;  %vm439_vm5 = vcmask 261120  }
 0x1bf   :  { %v281_v54 = vmul.f32 %v270_v52, %v247_v21  ;;  %v401_v21 = vld [vmem:[%s2196_s9 + $0x38] sm:$0xff] }
 0x1c0   :  { %v274_v56 = vmul.f32 0.5, %v273_v53  ;;  %420 = vmatpush.msra.mxu3 %v401_v21 }
 0x1c1   :  { %v286_v57 = vmul.f32 %v1350_v51, %v281_v54 }
 0x1c2   :  { %v275_v58 = vsub.f32 1.5, %v274_v56  ;;  %421 = vmatpush.msra.mxu3 %v400_v22 }
 0x1c3   :  { %v291_v59 = vadd.f32 %v1351_v55, %v286_v57 }
 0x1c4   :  { %v276_v60 = vmul.f32 %v1369_v48, %v275_v58  ;;  %422 = vmatpush.msra.mxu3 %v399_v23 }
 0x1c5   :  { %v293_v61 = vmax.f32 %v291_v59, 0.0 }
 0x1c6   :  { %v280_v62 = vsel %vm279_vm8, %v1369_v48, %v276_v60  ;;  %423 = vmatpush.msra.mxu3 %v398_v24 }
 0x1c7   :  { %1304 = vmatmul.msk.f32.vlgmr.msra.gmra.mxu1 %vm231_vm1, %v293_v61  ;;  %v282_v63 = vmul.f32 %v280_v62, %v248_v26  ;;  %v396_v26 = vld [vmem:[%s2196_s9 + $0x10] sm:$0xff] }
 0x1c8   :  { %424 = vmatpush.msra.mxu3 %v397_v25 }
 0x1c9   :  { %v287_v0 = vmul.f32 %v1350_v51, %v282_v63  ;;  %v1354_v51 = vld [vmem:[%s2231_s0] ss:$0 sm:$0xff]  ;;  %v1661_v63 = vmov 0.0  }
 0x1ca   :  { %425 = vmatpush.msra.mxu3 %v396_v26 }
 0x1cb   :  { %v292_v1 = vadd.f32 %v1351_v55, %v287_v0 }
 0x1cc   :  { %426 = vmatpush.msra.mxu3 %v395_v27 }
 0x1cd   :  { %v294_v2 = vmax.f32 %v292_v1, 0.0  ;;  %v1355_v1 = vld [vmem:[#allocation8] ss:$0 sm:$0xff] }
 0x1ce   :  { %427 = vmatpush.msra.mxu3 %v394_v28 }
 0x1cf   :  { %1305 = vmatmul.msk.f32.gmra.mxu1 %vm231_vm1, %v294_v2 }
 0x1d0   :  { %455 = vmatpush.msrb.mxu3 %v1909_v29 }
 0x1d2   :  { %456 = vmatpush.msrb.mxu3 %v1914_v30 }
 0x1d4   :  { %457 = vmatpush.msrb.mxu3 %v1928_v34 }
 0x1d6   :  { %458 = vmatpush.msrb.mxu3 %v1933_v35 }
 0x244   :  { %v330_v4 = vpop.f32.mrf.mxu1 }
 0x245   :  { %v331_v5 = vadd.f32 %v1352_v3, %v330_v4 }
 0x247   :  { %v338_v6 = vsel %vm231_vm1, %v331_v5, 0.0 }
 0x248   :  { %339 = vadd.xlane.f32.xlu2 %v338_v6 }
 0x24c   :  { %v333_v7 = vpop.f32.mrf.mxu1 }
 0x24d   :  { %v334_v8 = vadd.f32 %v1352_v3, %v333_v7 }
 0x24f   :  { %v341_v9 = vsel %vm231_vm1, %v334_v8, 0.0 }
 0x250   :  { %342 = vadd.xlane.f32.xlu2 %v341_v9 }
 0x2bb   :  { %v340_v10 = vpop.xlane.xlu2 %339 }
 0x2bc   :  { %v344_v11 = vmul.f32 %v340_v10, %v1828_v18 }
 0x2be   :  { %v1871_v12 = vsub.f32 %v331_v5, %v344_v11 }
 0x2c0   :  { %v348_v13 = vmul.f32 %v1871_v12, %v1871_v12 }
 0x2c2   :  { %v350_v14 = vsel %vm231_vm1, %v348_v13, 0.0 }
 0x2c3   :  { %351 = vadd.xlane.f32.xlu0 %v350_v14  ;;  %v343_v15 = vpop.xlane.xlu2 %342 }
 0x2c4   :  { %v345_v16 = vmul.f32 %v343_v15, %v1828_v18 }
 0x2c6   :  { %v1877_v17 = vsub.f32 %v334_v8, %v345_v16 }
 0x2c8   :  { %v349_v19 = vmul.f32 %v1877_v17, %v1877_v17 }
 0x2ca   :  { %v353_v20 = vsel %vm231_vm1, %v349_v19, 0.0 }
 0x2cb   :  { %354 = vadd.xlane.f32.xlu1 %v353_v20 }
 0x336   :  { %v352_v31 = vpop.xlane.xlu0 %351 }
 0x337   :  { %v356_v32 = vmul.f32 %v352_v31, %v1828_v18 }
 0x339   :  { %v358_v33 = vadd.f32 1e-05, %v356_v32 }
 0x33b   :  { %1370 = vrsqrt.f32 %v358_v33  ;;  %vm366_vm10 = vweird.f32 %v358_v33 }
 0x33e   :  { %v355_v36 = vpop.xlane.xlu1 %354 }
 0x33f   :  { %v357_v37 = vmul.f32 %v355_v36, %v1828_v18 }
 0x341   :  { %v1371_v38 = vpop.eup %1370  ;;  %v359_v39 = vadd.f32 1e-05, %v357_v37 }
 0x342   :  { %v361_v40 = vmul.f32 %v1371_v38, %v358_v33  ;;  %vm367_vm9 = vweird.f32 %v1371_v38 }
 0x343   :  { %1372 = vrsqrt.f32 %v359_v39  ;;  %vm368_vm11 = vmor %vm366_vm10, %vm367_vm9  ;;  %vm376_vm13 = vweird.f32 %v359_v39 }
 0x344   :  { %v362_v41 = vmul.f32 %v1371_v38, %v361_v40 }
 0x346   :  { %v363_v42 = vmul.f32 0.5, %v362_v41 }
 0x348   :  { %v364_v43 = vsub.f32 1.5, %v363_v42 }
 0x349   :  { %v1373_v44 = vpop.eup %1372 }
 0x34a   :  { %v365_v45 = vmul.f32 %v1371_v38, %v364_v43  ;;  %v371_v46 = vmul.f32 %v1373_v44, %v359_v39  ;;  %vm377_vm12 = vweird.f32 %v1373_v44 }
 0x34b   :  { %vm378_vm14 = vmor %vm376_vm13, %vm377_vm12 }
 0x34c   :  { %v369_v48 = vsel %vm368_vm11, %v1371_v38, %v365_v45  ;;  %v372_v49 = vmul.f32 %v1373_v44, %v371_v46 }
 0x34d   :  { %v380_v50 = vmul.f32 %v369_v48, %v1871_v12 }
 0x34e   :  { %v373_v52 = vmul.f32 0.5, %v372_v49 }
 0x34f   :  { %v385_v53 = vmul.f32 %v1353_v47, %v380_v50 }
 0x350   :  { %v374_v54 = vsub.f32 1.5, %v373_v52 }
 0x351   :  { %v1955_v55 = vadd.f32 %v1354_v51, %v385_v53 }
 0x352   :  { %v375_v56 = vmul.f32 %v1373_v44, %v374_v54 }
 0x353   :  { %v392_v57 = vmax.f32 %v1955_v55, 0.0 }
 0x354   :  { %v379_v58 = vsel %vm378_vm14, %v1373_v44, %v375_v56 }
 0x355   :  { %1306 = vmatmul.msk.f32.vlgmr.msra.gmra.mxu3 %vm231_vm1, %v392_v57  ;;  %v381_v59 = vmul.f32 %v379_v58, %v1877_v17 }
 0x356   :  { %522 = vmatpush.msra.mxu3 %v1909_v29 }
 0x357   :  { %v386_v60 = vmul.f32 %v1353_v47, %v381_v59 }
 0x358   :  { %523 = vmatpush.msra.mxu3 %v1914_v30 }
 0x359   :  { %v1964_v61 = vadd.f32 %v1354_v51, %v386_v60 }
 0x35a   :  { %524 = vmatpush.msra.mxu3 %v1928_v34 }
 0x35b   :  { %v393_v62 = vmax.f32 %v1964_v61, 0.0 }
 0x35c   :  { %525 = vmatpush.msra.mxu3 %v1933_v35 }
 0x35d   :  { %1307 = vmatmul.msk.f32.gmra.mxu3 %vm231_vm1, %v393_v62 }
 0x365   :  { %459 = vmatmul.f32.vlgmr.msrb.gmra.mxu3 %v1661_v63 }
 0x366   :  { %676 = vmatpush.msrb.mxu3 %v1909_v29 }
 0x368   :  { %677 = vmatpush.msrb.mxu3 %v1914_v30 }
 0x36a   :  { %678 = vmatpush.msrb.mxu3 %v1928_v34 }
 0x36c   :  { %679 = vmatpush.msrb.mxu3 %v1933_v35 }
 0x3d8   :  { %v429_v0 = vpop.f32.mrf.mxu3 }
 0x3d9   :  { %v1978_v4 = vadd.f32 %v1355_v1, %v429_v0 }
 0x3e0   :  { %v432_v2 = vpop.f32.mrf.mxu3 }
 0x3e1   :  { %v1976_v3 = vadd.f32 %v1355_v1, %v432_v2 }
 0x3e8   :  { %v460_v5 = vpop.f32.mrf.mxu3 }
 0x3e9   :  { %v463_v6 = vadd.f32 %v460_v5, %v1978_v4 }
 0x3eb   :  { %1374 = vtanh.f32 %v463_v6  ;;  %v1308_v8 = vmul.f32 -1.442695, %v463_v6 }
 0x3ed   :  { %1376 = vpow2.f32 %v1308_v8 }
 0x3f1   :  { %v1375_v7 = vpop.eup %1374 }
 0x3f2   :  { %486 = vrot.lane.b32.xlu2 %v1375_v7, %s1662_s11 }
 0x3f3   :  { %v1377_v9 = vpop.eup %1376 }
 0x3f4   :  { %v467_v10 = vadd.f32 1.0, %v1377_v9 }
 0x3f6   :  { %1378 = vrcp.f32 %v467_v10  ;;  %v479_v16 = vand.u32 2147483648, %v467_v10  ;;  %vm473_vm0 = vweird.f32 %v467_v10  ;;  %v477_v17 = vand.u32 2147483647, %v467_v10 }
 0x3f8   :  { %v480_v20 = vor.u32 1.1754944e-38, %v479_v16  ;;  %vm478_vm3 = vcmp.eq.f32.partialorder %v477_v17, 8.507059e+37 }
 0x3fc   :  { %v1379_v11 = vpop.eup %1378 }
 0x3fd   :  { %v469_v12 = vmul.f32 %v1379_v11, %v467_v10  ;;  %vm474_vm15 = vweird.f32 %v1379_v11 }
 0x3fe   :  { %vm475_vm2 = vmor %vm473_vm0, %vm474_vm15 }
 0x3ff   :  { %v470_v13 = vsub.f32 1.0, %v469_v12 }
 0x401   :  { %v471_v14 = vmul.f32 %v1379_v11, %v470_v13 }
 0x403   :  { %v472_v15 = vadd.f32 %v1379_v11, %v471_v14 }
 0x405   :  { %v476_v19 = vsel %vm475_vm2, %v1379_v11, %v472_v15 }
 0x406   :  { %v481_v22 = vsel %vm478_vm3, %v480_v20, %v476_v19 }
 0x407   :  { %v484_v24 = vmul.f32 0.0, %v481_v22 }
 0x44c   :  { %v487_v21 = vpop.permute.xlu2 %486 }
 0x44d   :  { %v489_v23 = vmul.f32 %v487_v21, %v481_v22 }
 0x44f   :  { %491 = vrot.lane.b32.xlu0 %v489_v23, %s1663_s5 }
 0x4c1   :  { %v492_v25 = vpop.permute.xlu0 %491 }
 0x4c2   :  { %v494_v26 = vadd.f32 %v492_v25, %v484_v24 }
 0x4c4   :  { %1380 = vtanh.f32 %v494_v26  ;;  %v555_v50 = vrot.slane %v494_v26, 6 }
 0x4ca   :  { %v1381_v27 = vpop.eup %1380 }
 0x4cb   :  { %497 = vrot.lane.b32.xlu1 %v1381_v27, %s1662_s11 }
 0x53d   :  { %v498_v28 = vpop.permute.xlu1 %497 }
 0x53e   :  { %v500_v31 = vmul.f32 %v498_v28, %v481_v22 }
 0x540   :  { %502 = vrot.lane.b32.xlu2 %v500_v31, %s1663_s5 }
 0x59a   :  { %v503_v32 = vpop.permute.xlu2 %502 }
 0x59b   :  { %506 = vst.msk [vmem:[%s2210_s23] sm:$0x3] %vm505_vm4, %v503_v32  ;;  %1309 = vmatmul.msk.f32.vlgmr.msra.gmra.mxu3 %vm439_vm5, %v503_v32 }
 0x59c   :  { %507 = vst.msk [vmem:[#allocation2] sm:$0x3] %vm505_vm4, %v503_v32  ;;  %975 = vmatpush.msra.mxu3 %v1909_v29 }
 0x59e   :  { %976 = vmatpush.msra.mxu3 %v1914_v30 }
 0x5a0   :  { %977 = vmatpush.msra.mxu3 %v1928_v34 }
 0x5a2   :  { %978 = vmatpush.msra.mxu3 %v1933_v35 }
 0x61e   :  { %v527_v33 = vpop.f32.mrf.mxu3 }
 0x61f   :  { %v531_v36 = vrot.slane %v527_v33, 6 }
 0x621   :  { %v533_v37 = vadd.f32 %v531_v36, %v1978_v4 }
 0x623   :  { %1382 = vtanh.f32 %v533_v37  ;;  %v1310_v39 = vmul.f32 -1.442695, %v533_v37 }
 0x625   :  { %1384 = vpow2.f32 %v1310_v39 }
 0x629   :  { %v1383_v38 = vpop.eup %1382 }
 0x62a   :  { %559 = vrot.lane.b32.xlu0 %v1383_v38, %s1662_s11 }
 0x62b   :  { %v1385_v40 = vpop.eup %1384 }
 0x62c   :  { %v537_v41 = vadd.f32 1.0, %v1385_v40 }
 0x62e   :  { %1386 = vrcp.f32 %v537_v41  ;;  %v549_v35 = vand.u32 2147483648, %v537_v41  ;;  %vm543_vm7 = vweird.f32 %v537_v41  ;;  %v547_v44 = vand.u32 2147483647, %v537_v41 }
 0x630   :  { %v550_v46 = vor.u32 1.1754944e-38, %v549_v35  ;;  %vm548_vm9 = vcmp.eq.f32.partialorder %v547_v44, 8.507059e+37 }
 0x634   :  { %v1387_v29 = vpop.eup %1386 }
 0x635   :  { %v539_v42 = vmul.f32 %v1387_v29, %v537_v41  ;;  %vm544_vm6 = vweird.f32 %v1387_v29 }
 0x636   :  { %vm545_vm8 = vmor %vm543_vm7, %vm544_vm6 }
 0x637   :  { %v540_v30 = vsub.f32 1.0, %v539_v42 }
 0x639   :  { %v541_v43 = vmul.f32 %v1387_v29, %v540_v30 }
 0x63b   :  { %v542_v34 = vadd.f32 %v1387_v29, %v541_v43 }
 0x63d   :  { %v546_v45 = vsel %vm545_vm8, %v1387_v29, %v542_v34 }
 0x63e   :  { %v551_v48 = vsel %vm548_vm9, %v550_v46, %v546_v45 }
 0x63f   :  { %v557_v51 = vmul.f32 %v555_v50, %v551_v48 }
 0x69c   :  { %v560_v47 = vpop.permute.xlu0 %559 }
 0x69d   :  { %v562_v49 = vmul.f32 %v560_v47, %v551_v48 }
 0x69f   :  { %564 = vrot.lane.b32.xlu2 %v562_v49, %s1663_s5 }
 0x6f9   :  { %v565_v52 = vpop.permute.xlu2 %564 }
 0x6fa   :  { %v567_v53 = vadd.f32 %v565_v52, %v557_v51 }
 0x6fc   :  { %1388 = vtanh.f32 %v567_v53  ;;  %v632_v21 = vrot.slane %v567_v53, 6  ;;  %v1047_v53 = vld [vmem:[%s2200_s13 + $0x38] sm:$0xff] }
 0x702   :  { %v1389_v54 = vpop.eup %1388 }
 0x703   :  { %570 = vrot.lane.b32.xlu1 %v1389_v54, %s1662_s11  ;;  %v1046_v54 = vld [vmem:[%s2200_s13 + $0x30] sm:$0xff] }
 0x775   :  { %v571_v56 = vpop.permute.xlu1 %570 }
 0x776   :  { %v1999_v58 = vmul.f32 %v571_v56, %v551_v48  ;;  %v1045_v56 = vld [vmem:[%s2200_s13 + $0x28] sm:$0xff] }
 0x778   :  { %v582_v59 = vrot.slane %v1999_v58, 2 }
 0x77a   :  { %583 = vrot.lane.b32.xlu0 %v582_v59, %s1663_s5  ;;  %v1044_v59 = vld [vmem:[%s2200_s13 + $0x20] sm:$0xff] }
 0x7ec   :  { %v584_v60 = vpop.permute.xlu0 %583 }
 0x7ed   :  { %1312 = vmatmul.msk.f32.vlgmr.msrb.gmra.mxu0 %vm439_vm5, %v584_v60 }
 0x7ee   :  { %1056 = vmatpush.msrb.mxu0 %v1047_v53 }
 0x7f0   :  { %1057 = vmatpush.msrb.mxu0 %v1046_v54 }
 0x7f2   :  { %1058 = vmatpush.msrb.mxu0 %v1045_v56 }
 0x7f4   :  { %1059 = vmatpush.msrb.mxu0 %v1044_v59 }
 0x86a   :  { %v604_v63 = vpop.f32.mrf.mxu0 }
 0x86b   :  { %v608_v0 = vrot.slane %v604_v63, 4 }
 0x86d   :  { %v610_v1 = vadd.f32 %v608_v0, %v1978_v4 }
 0x86f   :  { %1390 = vtanh.f32 %v610_v1  ;;  %v1313_v5 = vmul.f32 -1.442695, %v610_v1  ;;  %v1043_v1 = vld [vmem:[%s2200_s13 + $0x18] sm:$0xff] }
 0x870   :  { %1060 = vmatpush.msrb.mxu0 %v1043_v1 }
 0x871   :  { %1392 = vpow2.f32 %v1313_v5  ;;  %v1041_v5 = vld [vmem:[%s2200_s13 + $0x8] sm:$0xff] }
 0x875   :  { %v1391_v2 = vpop.eup %1390 }
 0x876   :  { %636 = vrot.lane.b32.xlu2 %v1391_v2, %s1662_s11  ;;  %v1042_v2 = vld [vmem:[%s2200_s13 + $0x10] sm:$0xff] }
 0x877   :  { %v1393_v6 = vpop.eup %1392  ;;  %1061 = vmatpush.msrb.mxu0 %v1042_v2 }
 0x878   :  { %v614_v7 = vadd.f32 1.0, %v1393_v6  ;;  %v1040_v6 = vld [vmem:[%s2200_s13] sm:$0xff] }
 0x879   :  { %1062 = vmatpush.msrb.mxu0 %v1041_v5 }
 0x87a   :  { %1394 = vrcp.f32 %v614_v7  ;;  %v626_v13 = vand.u32 2147483648, %v614_v7  ;;  %vm620_vm11 = vweird.f32 %v614_v7  ;;  %v624_v14 = vand.u32 2147483647, %v614_v7 }
 0x87b   :  { %1063 = vmatpush.msrb.mxu0 %v1040_v6 }
 0x87c   :  { %v627_v16 = vor.u32 1.1754944e-38, %v626_v13  ;;  %vm625_vm13 = vcmp.eq.f32.partialorder %v624_v14, 8.507059e+37 }
 0x880   :  { %v1395_v8 = vpop.eup %1394 }
 0x881   :  { %v616_v9 = vmul.f32 %v1395_v8, %v614_v7  ;;  %vm621_vm10 = vweird.f32 %v1395_v8 }
 0x882   :  { %vm622_vm12 = vmor %vm620_vm11, %vm621_vm10 }
 0x883   :  { %v617_v10 = vsub.f32 1.0, %v616_v9 }
 0x885   :  { %v618_v11 = vmul.f32 %v1395_v8, %v617_v10 }
 0x887   :  { %v619_v12 = vadd.f32 %v1395_v8, %v618_v11 }
 0x889   :  { %v623_v15 = vsel %vm622_vm12, %v1395_v8, %v619_v12 }
 0x88a   :  { %v628_v19 = vsel %vm625_vm13, %v627_v16, %v623_v15 }
 0x88b   :  { %v634_v22 = vmul.f32 %v632_v21, %v628_v19 }
 0x8d0   :  { %v637_v17 = vpop.permute.xlu2 %636 }
 0x8d1   :  { %v639_v20 = vmul.f32 %v637_v17, %v628_v19 }
 0x8d3   :  { %641 = vrot.lane.b32.xlu1 %v639_v20, %s1663_s5 }
 0x945   :  { %v642_v23 = vpop.permute.xlu1 %641 }
 0x946   :  { %v644_v24 = vadd.f32 %v642_v23, %v634_v22 }
 0x948   :  { %1396 = vtanh.f32 %v644_v24  ;;  %v709_v48 = vrot.slane %v644_v24, 6 }
 0x94e   :  { %v1397_v25 = vpop.eup %1396 }
 0x94f   :  { %647 = vrot.lane.b32.xlu0 %v1397_v25, %s1662_s11 }
 0x9c1   :  { %v648_v26 = vpop.permute.xlu0 %647 }
 0x9c2   :  { %v2008_v27 = vmul.f32 %v648_v26, %v628_v19 }
 0x9c4   :  { %v659_v28 = vrot.slane %v2008_v27, 4 }
 0x9c6   :  { %660 = vrot.lane.b32.xlu2 %v659_v28, %s1663_s5 }
 0xa20   :  { %v661_v31 = vpop.permute.xlu2 %660 }
 0xa21   :  { %1315 = vmatmul.msk.f32.vlgmr.msrb.gmra.mxu3 %vm439_vm5, %v661_v31 }
 0xaa4   :  { %v681_v32 = vpop.f32.mrf.mxu3 }
 0xaa5   :  { %v685_v33 = vrot.slane %v681_v32, 2 }
 0xaa7   :  { %v687_v36 = vadd.f32 %v685_v33, %v1978_v4 }
 0xaa9   :  { %1398 = vtanh.f32 %v687_v36  ;;  %v1316_v38 = vmul.f32 -1.442695, %v687_v36 }
 0xaab   :  { %1400 = vpow2.f32 %v1316_v38 }
 0xaaf   :  { %v1399_v37 = vpop.eup %1398 }
 0xab0   :  { %713 = vrot.lane.b32.xlu1 %v1399_v37, %s1662_s11 }
 0xab1   :  { %v1401_v39 = vpop.eup %1400 }
 0xab2   :  { %v691_v40 = vadd.f32 1.0, %v1401_v39 }
 0xab4   :  { %1402 = vrcp.f32 %v691_v40  ;;  %v703_v34 = vand.u32 2147483648, %v691_v40  ;;  %vm697_vm15 = vweird.f32 %v691_v40  ;;  %v701_v35 = vand.u32 2147483647, %v691_v40 }
 0xab6   :  { %v704_v44 = vor.u32 1.1754944e-38, %v703_v34  ;;  %vm702_vm2 = vcmp.eq.f32.partialorder %v701_v35, 8.507059e+37 }
 0xaba   :  { %v1403_v41 = vpop.eup %1402 }
 0xabb   :  { %v693_v29 = vmul.f32 %v1403_v41, %v691_v40  ;;  %vm698_vm14 = vweird.f32 %v1403_v41 }
 0xabc   :  { %vm699_vm0 = vmor %vm697_vm15, %vm698_vm14 }
 0xabd   :  { %v694_v42 = vsub.f32 1.0, %v693_v29 }
 0xabf   :  { %v695_v30 = vmul.f32 %v1403_v41, %v694_v42 }
 0xac1   :  { %v696_v43 = vadd.f32 %v1403_v41, %v695_v30 }
 0xac3   :  { %v700_v4 = vsel %vm699_vm0, %v1403_v41, %v696_v43 }
 0xac4   :  { %v705_v46 = vsel %vm702_vm2, %v704_v44, %v700_v4 }
 0xac5   :  { %v711_v49 = vmul.f32 %v709_v48, %v705_v46 }
 0xb22   :  { %v714_v45 = vpop.permute.xlu1 %713 }
 0xb23   :  { %v716_v47 = vmul.f32 %v714_v45, %v705_v46 }
 0xb25   :  { %718 = vrot.lane.b32.xlu0 %v716_v47, %s1663_s5 }
 0xb97   :  { %v719_v50 = vpop.permute.xlu0 %718 }
 0xb98   :  { %v721_v51 = vadd.f32 %v719_v50, %v711_v49 }
 0xb9a   :  { %1404 = vtanh.f32 %v721_v51  ;;  %v783_v23 = vrot.slane %v721_v51, 6 }
 0xba0   :  { %v1405_v52 = vpop.eup %1404 }
 0xba1   :  { %724 = vrot.lane.b32.xlu2 %v1405_v52, %s1662_s11 }
 0xbfb   :  { %v725_v60 = vpop.permute.xlu2 %724 }
 0xbfc   :  { %v2029_v63 = vmul.f32 %v725_v60, %v705_v46 }
 0xbfe   :  { %v736_v0 = vrot.slane %v2029_v63, 6 }
 0xc00   :  { %737 = vrot.lane.b32.xlu1 %v736_v0, %s1663_s5 }
 0xc72   :  { %v738_v7 = vpop.permute.xlu1 %737 }
 0xc73   :  { %1318 = vmatmul.msk.f32.vlgmr.msra.gmra.mxu0 %vm439_vm5, %v738_v7 }
 0xc7b   :  { %1330 = vmatmul.msk.f32.vlgmr.msrb.gmra.mxu0 %vm231_vm1, %v392_v57 }
 0xc83   :  { %1331 = vmatmul.msk.f32.gmra.mxu0 %vm231_vm1, %v393_v62 }
 0xcf0   :  { %v758_v8 = vpop.f32.mrf.mxu0 }
 0xcf1   :  { %v761_v9 = vadd.f32 %v758_v8, %v1976_v3 }
 0xcf3   :  { %1406 = vtanh.f32 %v761_v9  ;;  %v1319_v11 = vmul.f32 -1.442695, %v761_v9 }
 0xcf5   :  { %1408 = vpow2.f32 %v1319_v11 }
 0xcf9   :  { %v1407_v10 = vpop.eup %1406 }
 0xcfa   :  { %787 = vrot.lane.b32.xlu0 %v1407_v10, %s1662_s11 }
 0xcfb   :  { %v1409_v12 = vpop.eup %1408 }
 0xcfc   :  { %v765_v13 = vadd.f32 1.0, %v1409_v12 }
 0xcfe   :  { %1410 = vrcp.f32 %v765_v13  ;;  %v777_v61 = vand.u32 2147483648, %v765_v13  ;;  %vm771_vm6 = vweird.f32 %v765_v13  ;;  %v775_v62 = vand.u32 2147483647, %v765_v13 }
 0xd00   :  { %v778_v19 = vor.u32 1.1754944e-38, %v777_v61  ;;  %vm776_vm8 = vcmp.eq.f32.partialorder %v775_v62, 8.507059e+37 }
 0xd04   :  { %v1411_v14 = vpop.eup %1410 }
 0xd05   :  { %v767_v55 = vmul.f32 %v1411_v14, %v765_v13  ;;  %vm772_vm3 = vweird.f32 %v1411_v14 }
 0xd06   :  { %vm773_vm7 = vmor %vm771_vm6, %vm772_vm3 }
 0xd07   :  { %v768_v15 = vsub.f32 1.0, %v767_v55 }
 0xd09   :  { %v769_v57 = vmul.f32 %v1411_v14, %v768_v15 }
 0xd0b   :  { %v770_v16 = vadd.f32 %v1411_v14, %v769_v57 }
 0xd0d   :  { %v774_v17 = vsel %vm773_vm7, %v1411_v14, %v770_v16  ;;  %vm579_vm7 = vcmask 257026  }
 0xd0e   :  { %v779_v21 = vsel %vm776_vm8, %v778_v19, %v774_v17  ;;  %vm656_vm8 = vcmask 259076  }
 0xd0f   :  { %v785_v24 = vmul.f32 %v783_v23, %v779_v21 }
 0xd6c   :  { %v788_v20 = vpop.permute.xlu0 %787 }
 0xd6d   :  { %v790_v22 = vmul.f32 %v788_v20, %v779_v21 }
 0xd6f   :  { %792 = vrot.lane.b32.xlu2 %v790_v22, %s1663_s5 }
 0xdc9   :  { %v793_v25 = vpop.permute.xlu2 %792 }
 0xdca   :  { %v795_v26 = vadd.f32 %v793_v25, %v785_v24 }
 0xdcc   :  { %1412 = vtanh.f32 %v795_v26  ;;  %v856_v50 = vrot.slane %v795_v26, 6 }
 0xdd2   :  { %v1413_v28 = vpop.eup %1412 }
 0xdd3   :  { %798 = vrot.lane.b32.xlu1 %v1413_v28, %s1662_s11 }
 0xe45   :  { %v799_v31 = vpop.permute.xlu1 %798 }
 0xe46   :  { %v801_v32 = vmul.f32 %v799_v31, %v779_v21 }
 0xe48   :  { %803 = vrot.lane.b32.xlu0 %v801_v32, %s1663_s5 }
 0xeba   :  { %v804_v33 = vpop.permute.xlu0 %803 }
 0xebb   :  { %1320 = vst.msk [vmem:[%s2210_s23 + $0x8] sm:$0x3] %vm505_vm4, %v804_v33  ;;  %1321 = vmatmul.msk.f32.vlgmr.msrb.gmra.mxu1 %vm439_vm5, %v804_v33 }
 0xebc   :  { %808 = vst.msk [vmem:[#allocation2 + $0x8] sm:$0x3] %vm505_vm4, %v804_v33 }
 0xf38   :  { %v828_v36 = vpop.f32.mrf.mxu1 }
 0xf39   :  { %v832_v37 = vrot.slane %v828_v36, 6 }
 0xf3b   :  { %v834_v38 = vadd.f32 %v832_v37, %v1976_v3 }
 0xf3d   :  { %1414 = vtanh.f32 %v834_v38  ;;  %v1322_v40 = vmul.f32 -1.442695, %v834_v38 }
 0xf3f   :  { %1416 = vpow2.f32 %v1322_v40 }
 0xf43   :  { %v1415_v39 = vpop.eup %1414 }
 0xf44   :  { %860 = vrot.lane.b32.xlu2 %v1415_v39, %s1662_s11 }
 0xf45   :  { %v1417_v41 = vpop.eup %1416 }
 0xf46   :  { %v838_v29 = vadd.f32 1.0, %v1417_v41 }
 0xf48   :  { %1418 = vrcp.f32 %v838_v29  ;;  %v850_v4 = vand.u32 2147483648, %v838_v29  ;;  %vm844_vm4 = vweird.f32 %v838_v29  ;;  %v848_v44 = vand.u32 2147483647, %v838_v29 }
 0xf4a   :  { %v851_v46 = vor.u32 1.1754944e-38, %v850_v4  ;;  %vm849_vm11 = vcmp.eq.f32.partialorder %v848_v44, 8.507059e+37 }
 0xf4e   :  { %v1419_v42 = vpop.eup %1418 }
 0xf4f   :  { %v840_v30 = vmul.f32 %v1419_v42, %v838_v29  ;;  %vm845_vm9 = vweird.f32 %v1419_v42 }
 0xf50   :  { %vm846_vm10 = vmor %vm844_vm4, %vm845_vm9  ;;  %vm733_vm9 = vcmask 261126  }
 0xf51   :  { %v841_v43 = vsub.f32 1.0, %v840_v30 }
 0xf53   :  { %v842_v34 = vmul.f32 %v1419_v42, %v841_v43 }
 0xf55   :  { %v843_v35 = vadd.f32 %v1419_v42, %v842_v34 }
 0xf57   :  { %v847_v45 = vsel %vm846_vm10, %v1419_v42, %v843_v35 }
 0xf58   :  { %v852_v48 = vsel %vm849_vm11, %v851_v46, %v847_v45 }
 0xf59   :  { %v858_v51 = vmul.f32 %v856_v50, %v852_v48 }
 0xf9e   :  { %v861_v47 = vpop.permute.xlu2 %860 }
 0xf9f   :  { %v863_v49 = vmul.f32 %v861_v47, %v852_v48 }
 0xfa1   :  { %865 = vrot.lane.b32.xlu1 %v863_v49, %s1663_s5 }
0x1013   :  { %v866_v52 = vpop.permute.xlu1 %865 }
0x1014   :  { %v868_v53 = vadd.f32 %v866_v52, %v858_v51 }
0x1016   :  { %1420 = vtanh.f32 %v868_v53  ;;  %v932_v19 = vrot.slane %v868_v53, 6  ;;  %v1039_v53 = vld [vmem:[#allocation9 + $0x18] sm:$0xff] }
0x1017   :  { %1089 = vmatpush.msra.mxu1 %v1039_v53 }
0x101c   :  { %v1421_v54 = vpop.eup %1420 }
0x101d   :  { %871 = vrot.lane.b32.xlu0 %v1421_v54, %s1662_s11  ;;  %v1038_v54 = vld [vmem:[#allocation9 + $0x10] sm:$0xff] }
0x101e   :  { %1090 = vmatpush.msra.mxu1 %v1038_v54 }
0x108f   :  { %v872_v56 = vpop.permute.xlu0 %871 }
0x1090   :  { %v874_v59 = vmul.f32 %v872_v56, %v852_v48  ;;  %v1037_v56 = vld [vmem:[#allocation9 + $0x8] sm:$0xff] }
0x1091   :  { %1091 = vmatpush.msra.mxu1 %v1037_v56 }
0x1092   :  { %v882_v60 = vrot.slane %v874_v59, 2 }
0x1094   :  { %883 = vrot.lane.b32.xlu2 %v882_v60, %s1663_s5 }
0x10ee   :  { %v884_v0 = vpop.permute.xlu2 %883 }
0x10ef   :  { %1324 = vmatmul.msk.f32.vlgmr.msra.gmra.mxu2 %vm439_vm5, %v884_v0 }
0x1172   :  { %v904_v1 = vpop.f32.mrf.mxu2 }
0x1173   :  { %v908_v2 = vrot.slane %v904_v1, 4 }
0x1175   :  { %v910_v5 = vadd.f32 %v908_v2, %v1976_v3 }
0x1177   :  { %1422 = vtanh.f32 %v910_v5  ;;  %v1325_v7 = vmul.f32 -1.442695, %v910_v5 }
0x1179   :  { %1424 = vpow2.f32 %v1325_v7  ;;  %v1065_v7 = vpop.f32.mrf.mxu0 }
0x117d   :  { %v1423_v6 = vpop.eup %1422 }
0x117e   :  { %936 = vrot.lane.b32.xlu1 %v1423_v6, %s1662_s11  ;;  %v1356_v6 = vld [vmem:[%s2201_s14] ss:$0 sm:$0xff] }
0x117f   :  { %v1425_v8 = vpop.eup %1424 }
0x1180   :  { %v914_v9 = vadd.f32 1.0, %v1425_v8 }
0x1182   :  { %1426 = vrcp.f32 %v914_v9  ;;  %v926_v55 = vand.u32 2147483648, %v914_v9  ;;  %vm920_vm13 = vweird.f32 %v914_v9  ;;  %v924_v15 = vand.u32 2147483647, %v914_v9 }
0x1184   :  { %v927_v16 = vor.u32 1.1754944e-38, %v926_v55  ;;  %vm925_vm15 = vcmp.eq.f32.partialorder %v924_v15, 8.507059e+37  ;;  %v1068_v55 = vpop.f32.mrf.mxu0 }
0x1188   :  { %v1427_v10 = vpop.eup %1426 }
0x1189   :  { %v916_v11 = vmul.f32 %v1427_v10, %v914_v9  ;;  %vm921_vm12 = vweird.f32 %v1427_v10 }
0x118a   :  { %vm922_vm14 = vmor %vm920_vm13, %vm921_vm12 }
0x118b   :  { %v917_v12 = vsub.f32 1.0, %v916_v11  ;;  %v1664_v11 = vmov 128.0  }
0x118d   :  { %v918_v13 = vmul.f32 %v1427_v10, %v917_v12 }
0x118f   :  { %v919_v14 = vadd.f32 %v1427_v10, %v918_v13 }
0x1191   :  { %v923_v57 = vsel %vm922_vm14, %v1427_v10, %v919_v14 }
0x1192   :  { %v928_v62 = vsel %vm925_vm15, %v927_v16, %v923_v57 }
0x1193   :  { %v934_v20 = vmul.f32 %v932_v19, %v928_v62 }
0x11f0   :  { %v937_v61 = vpop.permute.xlu1 %936 }
0x11f1   :  { %v939_v17 = vmul.f32 %v937_v61, %v928_v62 }
0x11f3   :  { %941 = vrot.lane.b32.xlu0 %v939_v17, %s1663_s5 }
0x1265   :  { %v942_v21 = vpop.permute.xlu0 %941 }
0x1266   :  { %v944_v22 = vadd.f32 %v942_v21, %v934_v20 }
0x1268   :  { %1428 = vtanh.f32 %v944_v22  ;;  %v1008_v47 = vrot.slane %v944_v22, 6 }
0x126e   :  { %v1429_v23 = vpop.eup %1428 }
0x126f   :  { %947 = vrot.lane.b32.xlu2 %v1429_v23, %s1662_s11  ;;  %v1182_v23 = vld [vmem:[%s2204_s17 + $0x78] sm:$0xff] }
0x1270   :  { %1187 = vmatpush.msrb.mxu2 %v1182_v23 }
0x12c9   :  { %v948_v24 = vpop.permute.xlu2 %947 }
0x12ca   :  { %v950_v25 = vmul.f32 %v948_v24, %v928_v62  ;;  %v1181_v24 = vld [vmem:[%s2204_s17 + $0x70] sm:$0xff] }
0x12cb   :  { %1188 = vmatpush.msrb.mxu2 %v1181_v24 }
0x12cc   :  { %v958_v26 = vrot.slane %v950_v25, 4 }
0x12ce   :  { %959 = vrot.lane.b32.xlu1 %v958_v26, %s1663_s5  ;;  %v1179_v26 = vld [vmem:[%s2204_s17 + $0x60] sm:$0xff] }
0x1340   :  { %v960_v28 = vpop.permute.xlu1 %959 }
0x1341   :  { %1327 = vmatmul.msk.f32.vlgmr.msra.gmra.mxu3 %vm439_vm5, %v960_v28  ;;  %v1178_v28 = vld [vmem:[%s2204_s17 + $0x58] sm:$0xff] }
0x13c4   :  { %v980_v31 = vpop.f32.mrf.mxu3 }
0x13c5   :  { %v984_v32 = vrot.slane %v980_v31, 2  ;;  %v1177_v31 = vld [vmem:[%s2204_s17 + $0x50] sm:$0xff] }
0x13c7   :  { %v986_v33 = vadd.f32 %v984_v32, %v1976_v3  ;;  %v1176_v32 = vld [vmem:[%s2204_s17 + $0x48] sm:$0xff] }
0x13c9   :  { %1430 = vtanh.f32 %v986_v33  ;;  %v1328_v37 = vmul.f32 -1.442695, %v986_v33  ;;  %v1175_v33 = vld [vmem:[%s2204_s17 + $0x40] sm:$0xff] }
0x13cb   :  { %1432 = vpow2.f32 %v1328_v37  ;;  %v1173_v37 = vld [vmem:[%s2204_s17 + $0x30] sm:$0xff] }
0x13cf   :  { %v1431_v36 = vpop.eup %1430 }
0x13d0   :  { %1012 = vrot.lane.b32.xlu0 %v1431_v36, %s1662_s11  ;;  %v1174_v36 = vld [vmem:[%s2204_s17 + $0x38] sm:$0xff] }
0x13d1   :  { %v1433_v38 = vpop.eup %1432 }
0x13d2   :  { %v990_v39 = vadd.f32 1.0, %v1433_v38 }
0x13d4   :  { %1434 = vrcp.f32 %v990_v39  ;;  %v1002_v3 = vand.u32 2147483648, %v990_v39  ;;  %vm996_vm2 = vweird.f32 %v990_v39  ;;  %v1000_v43 = vand.u32 2147483647, %v990_v39 }
0x13d6   :  { %v1003_v35 = vor.u32 1.1754944e-38, %v1002_v3  ;;  %vm1001_vm6 = vcmp.eq.f32.partialorder %v1000_v43, 8.507059e+37  ;;  %v1168_v43 = vld [vmem:[%s2204_s17 + $0x8] sm:$0xff] }
0x13d8   :  { %575 = vrot.lane.b32.xlu0 %v1999_v58, %s1663_s5 }
0x13da   :  { %v1435_v40 = vpop.eup %1434 }
0x13db   :  { %v992_v41 = vmul.f32 %v1435_v40, %v990_v39  ;;  %vm997_vm0 = vweird.f32 %v1435_v40  ;;  %v1172_v39 = vld [vmem:[%s2204_s17 + $0x28] sm:$0xff] }
0x13dc   :  { %vm998_vm3 = vmor %vm996_vm2, %vm997_vm0 }
0x13dd   :  { %v993_v29 = vsub.f32 1.0, %v992_v41  ;;  %v1171_v41 = vld [vmem:[%s2204_s17 + $0x20] sm:$0xff] }
0x13df   :  { %v994_v42 = vmul.f32 %v1435_v40, %v993_v29 }
0x13e0   :  { %876 = vrot.lane.b32.xlu0 %v874_v59, %s1663_s5  ;;  %v1036_v59 = vld [vmem:[#allocation9] sm:$0xff] }
0x13e1   :  { %v995_v30 = vadd.f32 %v1435_v40, %v994_v42  ;;  %1092 = vmatpush.msra.mxu1 %v1036_v59  ;;  %v1170_v42 = vld [vmem:[%s2204_s17 + $0x18] sm:$0xff] }
0x13e3   :  { %v999_v34 = vsel %vm998_vm3, %v1435_v40, %v995_v30  ;;  %v1169_v30 = vld [vmem:[%s2204_s17 + $0x10] sm:$0xff] }
0x13e4   :  { %v1004_v4 = vsel %vm1001_vm6, %v1003_v35, %v999_v34  ;;  %v1167_v34 = vld [vmem:[%s2204_s17] sm:$0xff] }
0x13e5   :  { %v1010_v48 = vmul.f32 %v1008_v47, %v1004_v4 }
0x1442   :  { %v1013_v58 = vpop.permute.xlu0 %1012 }
0x1443   :  { %v1015_v44 = vmul.f32 %v1013_v58, %v1004_v4 }
0x1445   :  { %1017 = vrot.lane.b32.xlu2 %v1015_v44, %s1663_s5 }
0x144a   :  { %v576_v45 = vpop.permute.xlu0 %575 }
0x144b   :  { %1311 = vst.msk [vmem:[%s2210_s23] sm:$0xc] %vm579_vm7, %v576_v45 }
0x144c   :  { %581 = vst.msk [vmem:[#allocation2] sm:$0xc] %vm579_vm7, %v576_v45 }
0x144d   :  { %652 = vrot.lane.b32.xlu2 %v2008_v27, %s1663_s5 }
0x1452   :  { %v877_v46 = vpop.permute.xlu0 %876 }
0x1453   :  { %1323 = vst.msk [vmem:[%s2210_s23 + $0x8] sm:$0xc] %vm579_vm7, %v877_v46 }
0x1454   :  { %881 = vst.msk [vmem:[#allocation2 + $0x8] sm:$0xc] %vm579_vm7, %v877_v46 }
0x1455   :  { %952 = vrot.lane.b32.xlu2 %v950_v25, %s1663_s5  ;;  %v1180_v25 = vld [vmem:[%s2204_s17 + $0x68] sm:$0xff] }
0x1456   :  { %1189 = vmatpush.msrb.mxu2 %v1180_v25 }
0x1458   :  { %1190 = vmatpush.msrb.mxu2 %v1179_v26 }
0x145a   :  { %1191 = vmatpush.msrb.mxu2 %v1178_v28 }
0x145c   :  { %1192 = vmatpush.msrb.mxu2 %v1177_v31 }
0x145e   :  { %1193 = vmatpush.msrb.mxu2 %v1176_v32 }
0x1460   :  { %1194 = vmatpush.msrb.mxu2 %v1175_v33 }
0x1462   :  { %1195 = vmatpush.msrb.mxu2 %v1174_v36 }
0x1464   :  { %1196 = vmatpush.msrb.mxu2 %v1173_v37 }
0x1466   :  { %1197 = vmatpush.msrb.mxu2 %v1172_v39 }
0x1468   :  { %1198 = vmatpush.msrb.mxu2 %v1171_v41  ;;  %v1360_v41 = vld [vmem:[#allocation12] ss:$0 sm:$0xff] }
0x146a   :  { %1199 = vmatpush.msrb.mxu2 %v1170_v42 }
0x146c   :  { %1200 = vmatpush.msrb.mxu2 %v1169_v30  ;;  %v1361_v30 = vld [vmem:[#allocation14] ss:$0 sm:$0xff] }
0x146e   :  { %1201 = vmatpush.msrb.mxu2 %v1168_v43 }
0x1470   :  { %1202 = vmatpush.msrb.mxu2 %v1167_v34  ;;  %v1362_v34 = vld [vmem:[#allocation15] ss:$0 sm:$0xff] }
0x149f   :  { %v1018_v49 = vpop.permute.xlu2 %1017 }
0x14a0   :  { %v1020_v50 = vadd.f32 %v1018_v49, %v1010_v48 }
0x14a2   :  { %1436 = vtanh.f32 %v1020_v50  ;;  %v1357_v50 = vld [vmem:[%s2202_s15] ss:$0 sm:$0xff] }
0x14a3   :  { %1438 = vrcp.f32 %v1664_v11 }
0x14a7   :  { %v653_v51 = vpop.permute.xlu2 %652 }
0x14a8   :  { %v1437_v52 = vpop.eup %1436  ;;  %1314 = vst.msk [vmem:[%s2210_s23] sm:$0x30] %vm656_vm8, %v653_v51 }
0x14a9   :  { %658 = vst.msk [vmem:[#allocation2] sm:$0x30] %vm656_vm8, %v653_v51  ;;  %1023 = vrot.lane.b32.xlu1 %v1437_v52, %s1662_s11  ;;  %v1439_v12 = vpop.eup %1438 }
0x14aa   :  { %v1113_v13 = vmul.f32 128.0, %v1439_v12 }
0x14ac   :  { %v1114_v14 = vsub.f32 1.0, %v1113_v13  ;;  %v1359_v13 = vld [vmem:[#allocation11] ss:$0 sm:$0xff] }
0x14ae   :  { %v1115_v16 = vmul.f32 %v1439_v12, %v1114_v14 }
0x14af   :  { %v953_v27 = vpop.permute.xlu2 %952 }
0x14b0   :  { %1326 = vst.msk [vmem:[%s2210_s23 + $0x8] sm:$0x30] %vm656_vm8, %v953_v27  ;;  %v1116_v62 = vadd.f32 %v1439_v12, %v1115_v16 }
0x14b1   :  { %957 = vst.msk [vmem:[#allocation2 + $0x8] sm:$0x30] %vm656_vm8, %v953_v27  ;;  %729 = vrot.lane.b32.xlu1 %v2029_v63, %s1663_s5  ;;  %v1358_v27 = vld [vmem:[%s2203_s16] ss:$0 sm:$0xff]  ;;  %vm1286_vm8 = vcmask 7168  }
0x151b   :  { %v1024_v60 = vpop.permute.xlu1 %1023 }
0x151c   :  { %v1026_v0 = vmul.f32 %v1024_v60, %v1004_v4 }
0x151e   :  { %1028 = vrot.lane.b32.xlu1 %v1026_v0, %s1663_s5 }
0x1523   :  { %v730_v1 = vpop.permute.xlu1 %729 }
0x1524   :  { %1317 = vst.msk [vmem:[%s2210_s23] sm:$0xc0] %vm733_vm9, %v730_v1 }
0x1525   :  { %735 = vst.msk [vmem:[#allocation2] sm:$0xc0] %vm733_vm9, %v730_v1 }
0x152c   :  { %v1034_v63 = vld [vmem:[#allocation2] sm:$0xff] }
0x152d   :  { %1332 = vmatmul.msk.f32.vlgmr.msra.gmra.mxu1 %vm439_vm5, %v1034_v63 }
0x1590   :  { %v1029_v2 = vpop.permute.xlu1 %1028 }
0x1591   :  { %1329 = vst.msk [vmem:[%s2210_s23 + $0x8] sm:$0xc0] %vm733_vm9, %v1029_v2 }
0x1592   :  { %1033 = vst.msk [vmem:[#allocation2 + $0x8] sm:$0xc0] %vm733_vm9, %v1029_v2 }
0x1599   :  { %v1035_v5 = vld [vmem:[#allocation2 + $0x8] sm:$0xff] }
0x159a   :  { %1333 = vmatmul.msk.f32.gmra.mxu1 %vm439_vm5, %v1035_v5  ;;  %vm1117_vm5 = vweird.f32 %v1439_v12 }
0x159b   :  { %v2111_v17 = vsel %vm1117_vm5, %v1439_v12, %v1116_v62 }
0x15aa   :  { %v1094_v8 = vpop.f32.mrf.mxu1 }
0x15ab   :  { %v1095_v9 = vadd.f32 %v1094_v8, %v1065_v7 }
0x15ad   :  { %v1104_v10 = vadd.f32 %v1356_v6, %v1095_v9 }
0x15af   :  { %1108 = vadd.xlane.f32.xlu0 %v1104_v10 }
0x1617   :  { %v1097_v15 = vpop.f32.mrf.mxu1 }
0x1618   :  { %v1098_v57 = vadd.f32 %v1097_v15, %v1068_v55 }
0x161a   :  { %v1105_v61 = vadd.f32 %v1356_v6, %v1098_v57 }
0x161c   :  { %1110 = vadd.xlane.f32.xlu2 %v1105_v61 }
0x1622   :  { %v1109_v19 = vpop.xlane.xlu0 %1108 }
0x1623   :  { %v1119_v20 = vmul.f32 %v2111_v17, %v1109_v19 }
0x1625   :  { %v1121_v21 = vsub.f32 %v1104_v10, %v1119_v20 }
0x1627   :  { %v1123_v22 = vmul.f32 %v1121_v21, %v1121_v21 }
0x1629   :  { %1125 = vadd.xlane.f32.xlu1 %v1123_v22 }
0x168f   :  { %v1111_v38 = vpop.xlane.xlu2 %1110 }
0x1690   :  { %v1120_v40 = vmul.f32 %v2111_v17, %v1111_v38 }
0x1692   :  { %v1122_v29 = vsub.f32 %v1105_v61, %v1120_v40 }
0x1694   :  { %v1124_v3 = vmul.f32 %v1122_v29, %v1122_v29 }
0x1696   :  { %1127 = vadd.xlane.f32.xlu0 %v1124_v3 }
0x169c   :  { %v1126_v35 = vpop.xlane.xlu1 %1125 }
0x169d   :  { %v1129_v58 = vmul.f32 %v1126_v35, %v2111_v17 }
0x169f   :  { %v1131_v4 = vadd.f32 1e-05, %v1129_v58 }
0x16a1   :  { %1440 = vrsqrt.f32 %v1131_v4  ;;  %vm1139_vm10 = vweird.f32 %v1131_v4 }
0x16a7   :  { %v1441_v44 = vpop.eup %1440 }
0x16a8   :  { %v1134_v45 = vmul.f32 %v1441_v44, %v1131_v4  ;;  %vm1140_vm4 = vweird.f32 %v1441_v44 }
0x16a9   :  { %vm1141_vm11 = vmor %vm1139_vm10, %vm1140_vm4 }
0x16aa   :  { %v1135_v46 = vmul.f32 %v1441_v44, %v1134_v45 }
0x16ac   :  { %v1136_v47 = vmul.f32 0.5, %v1135_v46 }
0x16ae   :  { %v1137_v48 = vsub.f32 1.5, %v1136_v47 }
0x16b0   :  { %v1138_v49 = vmul.f32 %v1441_v44, %v1137_v48 }
0x16b2   :  { %v1142_v51 = vsel %vm1141_vm11, %v1441_v44, %v1138_v49 }
0x16b3   :  { %v1153_v52 = vmul.f32 %v1142_v51, %v1121_v21 }
0x16b5   :  { %v1158_v53 = vmul.f32 %v1357_v50, %v1153_v52 }
0x16b7   :  { %v1163_v54 = vadd.f32 %v1358_v27, %v1158_v53 }
0x16b9   :  { %v1165_v56 = vmax.f32 %v1163_v54, 0.0 }
0x16bb   :  { %1203 = vmatmul.f32.vlgmr.msrb.gmra.mxu2 %v1165_v56 }
0x1709   :  { %v1128_v59 = vpop.xlane.xlu0 %1127 }
0x170a   :  { %v1130_v60 = vmul.f32 %v1128_v59, %v2111_v17 }
0x170c   :  { %v1132_v0 = vadd.f32 1e-05, %v1130_v60 }
0x170e   :  { %1442 = vrsqrt.f32 %v1132_v0  ;;  %vm1149_vm13 = vweird.f32 %v1132_v0 }
0x1714   :  { %v1443_v1 = vpop.eup %1442 }
0x1715   :  { %v1144_v63 = vmul.f32 %v1443_v1, %v1132_v0  ;;  %vm1150_vm12 = vweird.f32 %v1443_v1 }
0x1716   :  { %vm1151_vm14 = vmor %vm1149_vm13, %vm1150_vm12 }
0x1717   :  { %v1145_v2 = vmul.f32 %v1443_v1, %v1144_v63 }
0x1719   :  { %v1146_v5 = vmul.f32 0.5, %v1145_v2 }
0x171b   :  { %v1147_v6 = vsub.f32 1.5, %v1146_v5 }
0x171d   :  { %v1148_v7 = vmul.f32 %v1443_v1, %v1147_v6 }
0x171f   :  { %v1152_v8 = vsel %vm1151_vm14, %v1443_v1, %v1148_v7 }
0x1720   :  { %v1154_v9 = vmul.f32 %v1152_v8, %v1122_v29 }
0x1722   :  { %v1159_v10 = vmul.f32 %v1357_v50, %v1154_v9 }
0x1724   :  { %v1164_v11 = vadd.f32 %v1358_v27, %v1159_v10 }
0x1726   :  { %v1166_v12 = vmax.f32 %v1164_v11, 0.0 }
0x1728   :  { %1206 = vmatmul.f32.gmra.mxu2 %v1166_v12 }
0x173e   :  { %v1204_v14 = vpop.f32.mrf.mxu2 }
0x173f   :  { %v1205_v55 = vadd.f32 %v1359_v13, %v1204_v14 }
0x1741   :  { %v1212_v15 = vsel %vm231_vm1, %v1205_v55, 0.0 }
0x1742   :  { %1213 = vadd.xlane.f32.xlu2 %v1212_v15 }
0x17ab   :  { %v1207_v57 = vpop.f32.mrf.mxu2 }
0x17ac   :  { %v1208_v16 = vadd.f32 %v1359_v13, %v1207_v57 }
0x17ae   :  { %v1215_v61 = vsel %vm231_vm1, %v1208_v16, 0.0 }
0x17af   :  { %1216 = vadd.xlane.f32.xlu1 %v1215_v61 }
0x17b5   :  { %v1214_v62 = vpop.xlane.xlu2 %1213 }
0x17b6   :  { %v1218_v17 = vmul.f32 %v1214_v62, %v1828_v18 }
0x17b8   :  { %v1220_v19 = vsub.f32 %v1205_v55, %v1218_v17 }
0x17ba   :  { %v1222_v20 = vmul.f32 %v1220_v19, %v1220_v19 }
0x17bc   :  { %v1224_v21 = vsel %vm231_vm1, %v1222_v20, 0.0 }
0x17bd   :  { %1225 = vadd.xlane.f32.xlu0 %v1224_v21 }
0x1822   :  { %v1217_v22 = vpop.xlane.xlu1 %1216 }
0x1823   :  { %v1219_v23 = vmul.f32 %v1217_v22, %v1828_v18 }
0x1825   :  { %v1221_v24 = vsub.f32 %v1208_v16, %v1219_v23 }
0x1827   :  { %v1223_v25 = vmul.f32 %v1221_v24, %v1221_v24 }
0x1829   :  { %v1227_v26 = vsel %vm231_vm1, %v1223_v25, 0.0 }
0x182a   :  { %1228 = vadd.xlane.f32.xlu2 %v1227_v26 }
0x1830   :  { %v1226_v28 = vpop.xlane.xlu0 %1225 }
0x1831   :  { %v1230_v31 = vmul.f32 %v1226_v28, %v1828_v18 }
0x1833   :  { %v1232_v32 = vadd.f32 1e-05, %v1230_v31 }
0x1835   :  { %1444 = vrsqrt.f32 %v1232_v32  ;;  %vm1240_vm0 = vweird.f32 %v1232_v32 }
0x183b   :  { %v1445_v33 = vpop.eup %1444 }
0x183c   :  { %v1235_v36 = vmul.f32 %v1445_v33, %v1232_v32  ;;  %vm1241_vm15 = vweird.f32 %v1445_v33 }
0x183d   :  { %vm1242_vm2 = vmor %vm1240_vm0, %vm1241_vm15 }
0x183e   :  { %v1236_v37 = vmul.f32 %v1445_v33, %v1235_v36 }
0x1840   :  { %v1237_v38 = vmul.f32 0.5, %v1236_v37 }
0x1842   :  { %v1238_v39 = vsub.f32 1.5, %v1237_v38 }
0x1844   :  { %v1239_v40 = vmul.f32 %v1445_v33, %v1238_v39 }
0x1846   :  { %v1243_v29 = vsel %vm1242_vm2, %v1445_v33, %v1239_v40 }
0x1847   :  { %v1254_v42 = vmul.f32 %v1243_v29, %v1220_v19 }
0x1849   :  { %v1259_v3 = vmul.f32 %v1360_v41, %v1254_v42 }
0x184b   :  { %v1264_v43 = vadd.f32 %v1361_v30, %v1259_v3 }
0x184d   :  { %v1266_v35 = vmax.f32 %v1264_v43, 0.0 }
0x184f   :  { %v1272_v58 = vmul.f32 %v1362_v34, %v1266_v35 }
0x1851   :  { %v1274_v4 = vsel %vm231_vm1, %v1272_v58, 0.0 }
0x1852   :  { %1275 = vadd.xlane.f32.xlu1 %v1274_v4 }
0x189d   :  { %v1229_v44 = vpop.xlane.xlu2 %1228 }
0x189e   :  { %v1231_v45 = vmul.f32 %v1229_v44, %v1828_v18  ;;  %v1363_v18 = vld [vmem:[#allocation3] ss:$0 sm:$0xff] }
0x18a0   :  { %v1233_v46 = vadd.f32 1e-05, %v1231_v45 }
0x18a2   :  { %1446 = vrsqrt.f32 %v1233_v46  ;;  %vm1250_vm6 = vweird.f32 %v1233_v46 }
0x18a8   :  { %v1447_v47 = vpop.eup %1446 }
0x18a9   :  { %v1245_v48 = vmul.f32 %v1447_v47, %v1233_v46  ;;  %vm1251_vm3 = vweird.f32 %v1447_v47 }
0x18aa   :  { %vm1252_vm7 = vmor %vm1250_vm6, %vm1251_vm3 }
0x18ab   :  { %v1246_v49 = vmul.f32 %v1447_v47, %v1245_v48 }
0x18ad   :  { %v1247_v50 = vmul.f32 0.5, %v1246_v49 }
0x18af   :  { %v1248_v51 = vsub.f32 1.5, %v1247_v50 }
0x18b1   :  { %v1249_v52 = vmul.f32 %v1447_v47, %v1248_v51 }
0x18b3   :  { %v1253_v27 = vsel %vm1252_vm7, %v1447_v47, %v1249_v52 }
0x18b4   :  { %v1255_v53 = vmul.f32 %v1253_v27, %v1221_v24 }
0x18b6   :  { %v1260_v54 = vmul.f32 %v1360_v41, %v1255_v53 }
0x18b8   :  { %v1265_v56 = vadd.f32 %v1361_v30, %v1260_v54 }
0x18ba   :  { %v1267_v59 = vmax.f32 %v1265_v56, 0.0 }
0x18bc   :  { %v1273_v60 = vmul.f32 %v1362_v34, %v1267_v59 }
0x18be   :  { %v1277_v0 = vsel %vm231_vm1, %v1273_v60, 0.0 }
0x18bf   :  { %1278 = vadd.xlane.f32.xlu0 %v1277_v0 }
0x18c5   :  { %v1276_v1 = vpop.xlane.xlu1 %1275 }
0x18c6   :  { %v1284_v63 = vadd.f32 %v1363_v18, %v1276_v1 }
0x18c8   :  { %1287 = vst.msk [vmem:[%s2211_s24] sm:$0xff] %vm1286_vm8, %v1284_v63 }
0x1932   :  { %v1279_v2 = vpop.xlane.xlu0 %1278 }
0x1933   :  { %v1285_v5 = vadd.f32 %v1363_v18, %v1279_v2 }
0x1935   :  { %1288 = vst.msk [vmem:[%s2211_s24 + $0x8] sm:$0xff] %vm1286_vm8, %v1285_v5 }
0x1936   :  { %1297 = vsyncpa [#allocation5], 1 }
0x1937   :  { %1298 = vsyncpa [#allocation7], 1 }
0x1938   :  { %1299 = vsyncpa [#allocation10], 1 }
0x1939   :  { %1300 = vsyncpa [#allocation13], 1 }
0x193a   :  { %1301 = vsyncpa [#allocation16], 1 }

</bundles_post_ra>
